<compile_context>
chip_gen: v7x
topology: tpu7x:2x2x1
jax: 0.10.0
libtpu: 0.0.40
codegen_flags: <defaults>
</compile_context>

<pallas_src>
import jax
import jax.numpy as jnp
from jax.experimental import pallas as pl
from jax.experimental.pallas import tpu as pltpu


def _make_conv3d_relu_kernel(Wp, MO):
    """Kernel closed over static geometry.

    Refs:
      z0/z1/z2 : (Hp*Wp, C_in)   padded depth slices d, d+1, d+2 (rows = ph*Wp+pw)
      w_ref    : (27, C_in, COUTP) tap weights, order kd*9 + kh*3 + kw
      b_ref    : (1, COUTP)
      o_ref    : (MO, COUTP)     MO = H*Wp output rows (cols >= W are garbage)
    """

    def kernel(z0_ref, z1_ref, z2_ref, w_ref, b_ref, o_ref):
        z_refs = (z0_ref, z1_ref, z2_ref)
        acc = jnp.zeros(o_ref.shape, jnp.float32)
        for kd in range(3):
            zr = z_refs[kd]
            for kh in range(3):
                for kw in range(3):
                    off = kh * Wp + kw                      # static shift
                    a = zr[off:off + MO, :]                 # (MO, C_in)
                    w = w_ref[kd * 9 + kh * 3 + kw]         # (C_in, COUTP)
                    acc = acc + jnp.dot(a, w, preferred_element_type=jnp.float32)
        acc = acc + b_ref[...].astype(jnp.float32)
        o_ref[...] = jnp.maximum(acc, 0.0).astype(o_ref.dtype)

    return kernel


def skip_block_forward(x_ncdhw, weight, bias, *, pass_thru=False,
                       compute_dtype=jnp.float32):
    """Forward pass of skip_block.

    x_ncdhw: (N, C_in, D, H, W)
    weight : (C_out, C_in, 3, 3, 3)  (PyTorch Conv3d weight layout)
    bias   : (C_out,)
    returns: (N, C_out, D, H, W)
    """
    if pass_thru:
        return x_ncdhw

    N, C_in, D, H, W = x_ncdhw.shape
    C_out = weight.shape[0]
    COUTP = pl.cdiv(C_out, 128) * 128          # lane-dense output width

    Dp, Hp, Wp = D + 2, H + 3, W + 2           # pad: D (1,1), H (1,2), W (1,1)
    MO = H * Wp                                # output rows per (n, d) step
    HWp = Hp * Wp                              # input rows per padded depth slice
    # Max row read per step: (MO-1) + 2*Wp + 2 = (H+2)*Wp + 1 < Hp*Wp  -> in bounds.

    # ---- glue (cheap, single-pass XLA ops; no 27x im2col tensor) ----
    x = jnp.transpose(x_ncdhw, (0, 2, 3, 4, 1)).astype(compute_dtype)  # N,D,H,W,C
    xp = jnp.pad(x, ((0, 0), (1, 1), (1, 2), (1, 1), (0, 0)))
    xf = xp.reshape(N, Dp, HWp, C_in)                                  # free reshape

    # weight (C_out, C_in, kd, kh, kw) -> (27, C_in, COUTP), zero-padded lanes
    w_taps = jnp.transpose(weight, (2, 3, 4, 1, 0)).reshape(27, C_in, C_out)
    w_taps = jnp.pad(w_taps, ((0, 0), (0, 0), (0, COUTP - C_out))).astype(compute_dtype)
    b_row = jnp.pad(bias.astype(jnp.float32).reshape(1, C_out),
                    ((0, 0), (0, COUTP - C_out)))

    kernel = _make_conv3d_relu_kernel(Wp=Wp, MO=MO)

    def x_spec(kd):
        # Full padded depth slice d+kd; leading dims squeezed out of the ref.
        return pl.BlockSpec((None, None, HWp, C_in),
                            lambda n, d, kd=kd: (n, d + kd, 0, 0))

    out = pl.pallas_call(
        kernel,
        out_shape=jax.ShapeDtypeStruct((N, D, MO, COUTP), x_ncdhw.dtype),
        grid_spec=pltpu.PrefetchScalarGridSpec(
            num_scalar_prefetch=0,
            grid=(N, D),
            in_specs=[
                x_spec(0), x_spec(1), x_spec(2),
                pl.BlockSpec((27, C_in, COUTP), lambda n, d: (0, 0, 0)),  # resident
                pl.BlockSpec((1, COUTP), lambda n, d: (0, 0)),            # resident
            ],
            out_specs=pl.BlockSpec((None, None, MO, COUTP),
                                   lambda n, d: (n, d, 0, 0)),
        ),
        compiler_params=pltpu.CompilerParams(
            dimension_semantics=("parallel", "parallel"),
            vmem_limit_bytes=64 * 1024 * 1024),
    )(xf, xf, xf, w_taps, b_row)

    # (N, D, H*Wp, COUTP) -> keep valid width/out-channel columns -> NCDHW
    out = out.reshape(N, D, H, Wp, COUTP)[:, :, :, :W, :C_out]
    return jnp.transpose(out, (0, 4, 1, 2, 3))


if __name__ == "__main__":
    key = jax.random.PRNGKey(0)
    k1, k2, k3 = jax.random.split(key, 3)

    # Small, non-cubic shapes consistent with a 3D-UNet skip block (NCDHW input).
    N, C_in, C_out = 2, 4, 8
    D, H, W = 6, 8, 14
    x = jax.random.normal(k1, (N, C_in, D, H, W), jnp.float32)

    # Deterministic Conv3d parameters (PyTorch shapes), Kaiming-uniform-like bound.
    fan_in = C_in * 3 * 3 * 3
    bound = 1.0 / (fan_in ** 0.5)
    weight = jax.random.uniform(k2, (C_out, C_in, 3, 3, 3), jnp.float32, -bound, bound)
    bias = jax.random.uniform(k3, (C_out,), jnp.float32, -bound, bound)

    y = jax.block_until_ready(skip_block_forward(x, weight, bias))

    # Reference: XLA conv with identical semantics to the PyTorch module.
    ref = jax.lax.conv_general_dilated(
        x, weight, window_strides=(1, 1, 1), padding=((1, 1), (1, 1), (1, 1)),
        dimension_numbers=("NCDHW", "OIDHW", "NCDHW"))
    ref = jnp.maximum(ref + bias[None, :, None, None, None], 0.0)

    assert y.shape == (N, C_out, D, H, W)
    assert jnp.allclose(y, ref, atol=1e-4, rtol=1e-4), float(jnp.max(jnp.abs(y - ref)))

    print("KERNEL_OK")
</pallas_src>

<mosaic_0001>
module attributes {stable_mosaic.version = 11 : i64} {
  func.func @kernel(%arg0: i32, %arg1: i32, %arg2: memref<1x1x176x4xf32, #tpu.memory_space<vmem>>, %arg3: memref<1x1x176x4xf32, #tpu.memory_space<vmem>>, %arg4: memref<1x1x176x4xf32, #tpu.memory_space<vmem>>, %arg5: memref<27x4x128xf32, #tpu.memory_space<vmem>>, %arg6: memref<1x128xf32, #tpu.memory_space<vmem>>, %arg7: memref<1x1x128x128xf32, #tpu.memory_space<vmem>>) attributes {dimension_semantics = [#tpu.dimension_semantics<parallel>, #tpu.dimension_semantics<parallel>], iteration_bounds = array<i64: 2, 6>, scalar_prefetch = 0 : i64, scratch_operands = 0 : i64, tpu.core_type = #tpu.core_type<tc>, window_params = [{transform_indices = @transform_0, window_bounds = array<i64: 1, 1, 176, 4>}, {transform_indices = @transform_1, window_bounds = array<i64: 1, 1, 176, 4>}, {transform_indices = @transform_2, window_bounds = array<i64: 1, 1, 176, 4>}, {pipeline_mode = #tpu.pipeline_mode<synchronous>, transform_indices = @transform_3, window_bounds = array<i64: 27, 4, 128>}, {pipeline_mode = #tpu.pipeline_mode<synchronous>, transform_indices = @transform_4, window_bounds = array<i64: 1, 128>}, {transform_indices = @transform_5, window_bounds = array<i64: 1, 1, 128, 128>}]} {
    %cst = arith.constant 0.000000e+00 : f32
    %0 = vector.broadcast %cst : f32 to vector<128x128xf32>
    %c0 = arith.constant 0 : index
    %c0_0 = arith.constant 0 : index
    %c0_1 = arith.constant 0 : index
    %c0_2 = arith.constant 0 : index
    %1 = vector.load %arg2[%c0, %c0_0, %c0_1, %c0_2] : memref<1x1x176x4xf32, #tpu.memory_space<vmem>>, vector<1x1x128x4xf32>
    %2 = vector.shape_cast %1 : vector<1x1x128x4xf32> to vector<128x4xf32>
    %c0_3 = arith.constant 0 : index
    %c0_4 = arith.constant 0 : index
    %c0_5 = arith.constant 0 : index
    %3 = vector.load %arg5[%c0_3, %c0_4, %c0_5] : memref<27x4x128xf32, #tpu.memory_space<vmem>>, vector<1x4x128xf32>
    %4 = vector.shape_cast %3 : vector<1x4x128xf32> to vector<4x128xf32>
    %cst_6 = arith.constant dense<0.000000e+00> : vector<128x128xf32>
    %5 = tpu.matmul %2, %4, %cst_6 {dimension_numbers = #tpu.dot_dimension_numbers<[1], [0], [0], [1], [0, 0, 1, 1], [], []>} : vector<128x4xf32>, vector<4x128xf32>, vector<128x128xf32> -> vector<128x128xf32>
    %6 = arith.addf %0, %5 : vector<128x128xf32>
    %c0_7 = arith.constant 0 : index
    %c0_8 = arith.constant 0 : index
    %c1 = arith.constant 1 : index
    %c0_9 = arith.constant 0 : index
    %7 = vector.load %arg2[%c0_7, %c0_8, %c1, %c0_9] : memref<1x1x176x4xf32, #tpu.memory_space<vmem>>, vector<1x1x128x4xf32>
    %8 = vector.shape_cast %7 : vector<1x1x128x4xf32> to vector<128x4xf32>
    %c1_10 = arith.constant 1 : index
    %c0_11 = arith.constant 0 : index
    %c0_12 = arith.constant 0 : index
    %9 = vector.load %arg5[%c1_10, %c0_11, %c0_12] : memref<27x4x128xf32, #tpu.memory_space<vmem>>, vector<1x4x128xf32>
    %10 = vector.shape_cast %9 : vector<1x4x128xf32> to vector<4x128xf32>
    %cst_13 = arith.constant dense<0.000000e+00> : vector<128x128xf32>
    %11 = tpu.matmul %8, %10, %cst_13 {dimension_numbers = #tpu.dot_dimension_numbers<[1], [0], [0], [1], [0, 0, 1, 1], [], []>} : vector<128x4xf32>, vector<4x128xf32>, vector<128x128xf32> -> vector<128x128xf32>
    %12 = arith.addf %6, %11 : vector<128x128xf32>
    %c0_14 = arith.constant 0 : index
    %c0_15 = arith.constant 0 : index
    %c2 = arith.constant 2 : index
    %c0_16 = arith.constant 0 : index
    %13 = vector.load %arg2[%c0_14, %c0_15, %c2, %c0_16] : memref<1x1x176x4xf32, #tpu.memory_space<vmem>>, vector<1x1x128x4xf32>
    %14 = vector.shape_cast %13 : vector<1x1x128x4xf32> to vector<128x4xf32>
    %c2_17 = arith.constant 2 : index
    %c0_18 = arith.constant 0 : index
    %c0_19 = arith.constant 0 : index
    %15 = vector.load %arg5[%c2_17, %c0_18, %c0_19] : memref<27x4x128xf32, #tpu.memory_space<vmem>>, vector<1x4x128xf32>
    %16 = vector.shape_cast %15 : vector<1x4x128xf32> to vector<4x128xf32>
    %cst_20 = arith.constant dense<0.000000e+00> : vector<128x128xf32>
    %17 = tpu.matmul %14, %16, %cst_20 {dimension_numbers = #tpu.dot_dimension_numbers<[1], [0], [0], [1], [0, 0, 1, 1], [], []>} : vector<128x4xf32>, vector<4x128xf32>, vector<128x128xf32> -> vector<128x128xf32>
    %18 = arith.addf %12, %17 : vector<128x128xf32>
    %c0_21 = arith.constant 0 : index
    %c0_22 = arith.constant 0 : index
    %c16 = arith.constant 16 : index
    %c0_23 = arith.constant 0 : index
    %19 = vector.load %arg2[%c0_21, %c0_22, %c16, %c0_23] : memref<1x1x176x4xf32, #tpu.memory_space<vmem>>, vector<1x1x128x4xf32>
    %20 = vector.shape_cast %19 : vector<1x1x128x4xf32> to vector<128x4xf32>
    %c3 = arith.constant 3 : index
    %c0_24 = arith.constant 0 : index
    %c0_25 = arith.constant 0 : index
    %21 = vector.load %arg5[%c3, %c0_24, %c0_25] : memref<27x4x128xf32, #tpu.memory_space<vmem>>, vector<1x4x128xf32>
    %22 = vector.shape_cast %21 : vector<1x4x128xf32> to vector<4x128xf32>
    %cst_26 = arith.constant dense<0.000000e+00> : vector<128x128xf32>
    %23 = tpu.matmul %20, %22, %cst_26 {dimension_numbers = #tpu.dot_dimension_numbers<[1], [0], [0], [1], [0, 0, 1, 1], [], []>} : vector<128x4xf32>, vector<4x128xf32>, vector<128x128xf32> -> vector<128x128xf32>
    %24 = arith.addf %18, %23 : vector<128x128xf32>
    %c0_27 = arith.constant 0 : index
    %c0_28 = arith.constant 0 : index
    %c17 = arith.constant 17 : index
    %c0_29 = arith.constant 0 : index
    %25 = vector.load %arg2[%c0_27, %c0_28, %c17, %c0_29] : memref<1x1x176x4xf32, #tpu.memory_space<vmem>>, vector<1x1x128x4xf32>
    %26 = vector.shape_cast %25 : vector<1x1x128x4xf32> to vector<128x4xf32>
    %c4 = arith.constant 4 : index
    %c0_30 = arith.constant 0 : index
    %c0_31 = arith.constant 0 : index
    %27 = vector.load %arg5[%c4, %c0_30, %c0_31] : memref<27x4x128xf32, #tpu.memory_space<vmem>>, vector<1x4x128xf32>
    %28 = vector.shape_cast %27 : vector<1x4x128xf32> to vector<4x128xf32>
    %cst_32 = arith.constant dense<0.000000e+00> : vector<128x128xf32>
    %29 = tpu.matmul %26, %28, %cst_32 {dimension_numbers = #tpu.dot_dimension_numbers<[1], [0], [0], [1], [0, 0, 1, 1], [], []>} : vector<128x4xf32>, vector<4x128xf32>, vector<128x128xf32> -> vector<128x128xf32>
    %30 = arith.addf %24, %29 : vector<128x128xf32>
    %c0_33 = arith.constant 0 : index
    %c0_34 = arith.constant 0 : index
    %c18 = arith.constant 18 : index
    %c0_35 = arith.constant 0 : index
    %31 = vector.load %arg2[%c0_33, %c0_34, %c18, %c0_35] : memref<1x1x176x4xf32, #tpu.memory_space<vmem>>, vector<1x1x128x4xf32>
    %32 = vector.shape_cast %31 : vector<1x1x128x4xf32> to vector<128x4xf32>
    %c5 = arith.constant 5 : index
    %c0_36 = arith.constant 0 : index
    %c0_37 = arith.constant 0 : index
    %33 = vector.load %arg5[%c5, %c0_36, %c0_37] : memref<27x4x128xf32, #tpu.memory_space<vmem>>, vector<1x4x128xf32>
    %34 = vector.shape_cast %33 : vector<1x4x128xf32> to vector<4x128xf32>
    %cst_38 = arith.constant dense<0.000000e+00> : vector<128x128xf32>
    %35 = tpu.matmul %32, %34, %cst_38 {dimension_numbers = #tpu.dot_dimension_numbers<[1], [0], [0], [1], [0, 0, 1, 1], [], []>} : vector<128x4xf32>, vector<4x128xf32>, vector<128x128xf32> -> vector<128x128xf32>
    %36 = arith.addf %30, %35 : vector<128x128xf32>
    %c0_39 = arith.constant 0 : index
    %c0_40 = arith.constant 0 : index
    %c32 = arith.constant 32 : index
    %c0_41 = arith.constant 0 : index
    %37 = vector.load %arg2[%c0_39, %c0_40, %c32, %c0_41] : memref<1x1x176x4xf32, #tpu.memory_space<vmem>>, vector<1x1x128x4xf32>
    %38 = vector.shape_cast %37 : vector<1x1x128x4xf32> to vector<128x4xf32>
    %c6 = arith.constant 6 : index
    %c0_42 = arith.constant 0 : index
    %c0_43 = arith.constant 0 : index
    %39 = vector.load %arg5[%c6, %c0_42, %c0_43] : memref<27x4x128xf32, #tpu.memory_space<vmem>>, vector<1x4x128xf32>
    %40 = vector.shape_cast %39 : vector<1x4x128xf32> to vector<4x128xf32>
    %cst_44 = arith.constant dense<0.000000e+00> : vector<128x128xf32>
    %41 = tpu.matmul %38, %40, %cst_44 {dimension_numbers = #tpu.dot_dimension_numbers<[1], [0], [0], [1], [0, 0, 1, 1], [], []>} : vector<128x4xf32>, vector<4x128xf32>, vector<128x128xf32> -> vector<128x128xf32>
    %42 = arith.addf %36, %41 : vector<128x128xf32>
    %c0_45 = arith.constant 0 : index
    %c0_46 = arith.constant 0 : index
    %c33 = arith.constant 33 : index
    %c0_47 = arith.constant 0 : index
    %43 = vector.load %arg2[%c0_45, %c0_46, %c33, %c0_47] : memref<1x1x176x4xf32, #tpu.memory_space<vmem>>, vector<1x1x128x4xf32>
    %44 = vector.shape_cast %43 : vector<1x1x128x4xf32> to vector<128x4xf32>
    %c7 = arith.constant 7 : index
    %c0_48 = arith.constant 0 : index
    %c0_49 = arith.constant 0 : index
    %45 = vector.load %arg5[%c7, %c0_48, %c0_49] : memref<27x4x128xf32, #tpu.memory_space<vmem>>, vector<1x4x128xf32>
    %46 = vector.shape_cast %45 : vector<1x4x128xf32> to vector<4x128xf32>
    %cst_50 = arith.constant dense<0.000000e+00> : vector<128x128xf32>
    %47 = tpu.matmul %44, %46, %cst_50 {dimension_numbers = #tpu.dot_dimension_numbers<[1], [0], [0], [1], [0, 0, 1, 1], [], []>} : vector<128x4xf32>, vector<4x128xf32>, vector<128x128xf32> -> vector<128x128xf32>
    %48 = arith.addf %42, %47 : vector<128x128xf32>
    %c0_51 = arith.constant 0 : index
    %c0_52 = arith.constant 0 : index
    %c34 = arith.constant 34 : index
    %c0_53 = arith.constant 0 : index
    %49 = vector.load %arg2[%c0_51, %c0_52, %c34, %c0_53] : memref<1x1x176x4xf32, #tpu.memory_space<vmem>>, vector<1x1x128x4xf32>
    %50 = vector.shape_cast %49 : vector<1x1x128x4xf32> to vector<128x4xf32>
    %c8 = arith.constant 8 : index
    %c0_54 = arith.constant 0 : index
    %c0_55 = arith.constant 0 : index
    %51 = vector.load %arg5[%c8, %c0_54, %c0_55] : memref<27x4x128xf32, #tpu.memory_space<vmem>>, vector<1x4x128xf32>
    %52 = vector.shape_cast %51 : vector<1x4x128xf32> to vector<4x128xf32>
    %cst_56 = arith.constant dense<0.000000e+00> : vector<128x128xf32>
    %53 = tpu.matmul %50, %52, %cst_56 {dimension_numbers = #tpu.dot_dimension_numbers<[1], [0], [0], [1], [0, 0, 1, 1], [], []>} : vector<128x4xf32>, vector<4x128xf32>, vector<128x128xf32> -> vector<128x128xf32>
    %54 = arith.addf %48, %53 : vector<128x128xf32>
    %c0_57 = arith.constant 0 : index
    %c0_58 = arith.constant 0 : index
    %c0_59 = arith.constant 0 : index
    %c0_60 = arith.constant 0 : index
    %55 = vector.load %arg3[%c0_57, %c0_58, %c0_59, %c0_60] : memref<1x1x176x4xf32, #tpu.memory_space<vmem>>, vector<1x1x128x4xf32>
    %56 = vector.shape_cast %55 : vector<1x1x128x4xf32> to vector<128x4xf32>
    %c9 = arith.constant 9 : index
    %c0_61 = arith.constant 0 : index
    %c0_62 = arith.constant 0 : index
    %57 = vector.load %arg5[%c9, %c0_61, %c0_62] : memref<27x4x128xf32, #tpu.memory_space<vmem>>, vector<1x4x128xf32>
    %58 = vector.shape_cast %57 : vector<1x4x128xf32> to vector<4x128xf32>
    %cst_63 = arith.constant dense<0.000000e+00> : vector<128x128xf32>
    %59 = tpu.matmul %56, %58, %cst_63 {dimension_numbers = #tpu.dot_dimension_numbers<[1], [0], [0], [1], [0, 0, 1, 1], [], []>} : vector<128x4xf32>, vector<4x128xf32>, vector<128x128xf32> -> vector<128x128xf32>
    %60 = arith.addf %54, %59 : vector<128x128xf32>
    %c0_64 = arith.constant 0 : index
    %c0_65 = arith.constant 0 : index
    %c1_66 = arith.constant 1 : index
    %c0_67 = arith.constant 0 : index
    %61 = vector.load %arg3[%c0_64, %c0_65, %c1_66, %c0_67] : memref<1x1x176x4xf32, #tpu.memory_space<vmem>>, vector<1x1x128x4xf32>
    %62 = vector.shape_cast %61 : vector<1x1x128x4xf32> to vector<128x4xf32>
    %c10 = arith.constant 10 : index
    %c0_68 = arith.constant 0 : index
    %c0_69 = arith.constant 0 : index
    %63 = vector.load %arg5[%c10, %c0_68, %c0_69] : memref<27x4x128xf32, #tpu.memory_space<vmem>>, vector<1x4x128xf32>
    %64 = vector.shape_cast %63 : vector<1x4x128xf32> to vector<4x128xf32>
    %cst_70 = arith.constant dense<0.000000e+00> : vector<128x128xf32>
    %65 = tpu.matmul %62, %64, %cst_70 {dimension_numbers = #tpu.dot_dimension_numbers<[1], [0], [0], [1], [0, 0, 1, 1], [], []>} : vector<128x4xf32>, vector<4x128xf32>, vector<128x128xf32> -> vector<128x128xf32>
    %66 = arith.addf %60, %65 : vector<128x128xf32>
    %c0_71 = arith.constant 0 : index
    %c0_72 = arith.constant 0 : index
    %c2_73 = arith.constant 2 : index
    %c0_74 = arith.constant 0 : index
    %67 = vector.load %arg3[%c0_71, %c0_72, %c2_73, %c0_74] : memref<1x1x176x4xf32, #tpu.memory_space<vmem>>, vector<1x1x128x4xf32>
    %68 = vector.shape_cast %67 : vector<1x1x128x4xf32> to vector<128x4xf32>
    %c11 = arith.constant 11 : index
    %c0_75 = arith.constant 0 : index
    %c0_76 = arith.constant 0 : index
    %69 = vector.load %arg5[%c11, %c0_75, %c0_76] : memref<27x4x128xf32, #tpu.memory_space<vmem>>, vector<1x4x128xf32>
    %70 = vector.shape_cast %69 : vector<1x4x128xf32> to vector<4x128xf32>
    %cst_77 = arith.constant dense<0.000000e+00> : vector<128x128xf32>
    %71 = tpu.matmul %68, %70, %cst_77 {dimension_numbers = #tpu.dot_dimension_numbers<[1], [0], [0], [1], [0, 0, 1, 1], [], []>} : vector<128x4xf32>, vector<4x128xf32>, vector<128x128xf32> -> vector<128x128xf32>
    %72 = arith.addf %66, %71 : vector<128x128xf32>
    %c0_78 = arith.constant 0 : index
    %c0_79 = arith.constant 0 : index
    %c16_80 = arith.constant 16 : index
    %c0_81 = arith.constant 0 : index
    %73 = vector.load %arg3[%c0_78, %c0_79, %c16_80, %c0_81] : memref<1x1x176x4xf32, #tpu.memory_space<vmem>>, vector<1x1x128x4xf32>
    %74 = vector.shape_cast %73 : vector<1x1x128x4xf32> to vector<128x4xf32>
    %c12 = arith.constant 12 : index
    %c0_82 = arith.constant 0 : index
    %c0_83 = arith.constant 0 : index
    %75 = vector.load %arg5[%c12, %c0_82, %c0_83] : memref<27x4x128xf32, #tpu.memory_space<vmem>>, vector<1x4x128xf32>
    %76 = vector.shape_cast %75 : vector<1x4x128xf32> to vector<4x128xf32>
    %cst_84 = arith.constant dense<0.000000e+00> : vector<128x128xf32>
    %77 = tpu.matmul %74, %76, %cst_84 {dimension_numbers = #tpu.dot_dimension_numbers<[1], [0], [0], [1], [0, 0, 1, 1], [], []>} : vector<128x4xf32>, vector<4x128xf32>, vector<128x128xf32> -> vector<128x128xf32>
    %78 = arith.addf %72, %77 : vector<128x128xf32>
    %c0_85 = arith.constant 0 : index
    %c0_86 = arith.constant 0 : index
    %c17_87 = arith.constant 17 : index
    %c0_88 = arith.constant 0 : index
    %79 = vector.load %arg3[%c0_85, %c0_86, %c17_87, %c0_88] : memref<1x1x176x4xf32, #tpu.memory_space<vmem>>, vector<1x1x128x4xf32>
    %80 = vector.shape_cast %79 : vector<1x1x128x4xf32> to vector<128x4xf32>
    %c13 = arith.constant 13 : index
    %c0_89 = arith.constant 0 : index
    %c0_90 = arith.constant 0 : index
    %81 = vector.load %arg5[%c13, %c0_89, %c0_90] : memref<27x4x128xf32, #tpu.memory_space<vmem>>, vector<1x4x128xf32>
    %82 = vector.shape_cast %81 : vector<1x4x128xf32> to vector<4x128xf32>
    %cst_91 = arith.constant dense<0.000000e+00> : vector<128x128xf32>
    %83 = tpu.matmul %80, %82, %cst_91 {dimension_numbers = #tpu.dot_dimension_numbers<[1], [0], [0], [1], [0, 0, 1, 1], [], []>} : vector<128x4xf32>, vector<4x128xf32>, vector<128x128xf32> -> vector<128x128xf32>
    %84 = arith.addf %78, %83 : vector<128x128xf32>
    %c0_92 = arith.constant 0 : index
    %c0_93 = arith.constant 0 : index
    %c18_94 = arith.constant 18 : index
    %c0_95 = arith.constant 0 : index
    %85 = vector.load %arg3[%c0_92, %c0_93, %c18_94, %c0_95] : memref<1x1x176x4xf32, #tpu.memory_space<vmem>>, vector<1x1x128x4xf32>
    %86 = vector.shape_cast %85 : vector<1x1x128x4xf32> to vector<128x4xf32>
    %c14 = arith.constant 14 : index
    %c0_96 = arith.constant 0 : index
    %c0_97 = arith.constant 0 : index
    %87 = vector.load %arg5[%c14, %c0_96, %c0_97] : memref<27x4x128xf32, #tpu.memory_space<vmem>>, vector<1x4x128xf32>
    %88 = vector.shape_cast %87 : vector<1x4x128xf32> to vector<4x128xf32>
    %cst_98 = arith.constant dense<0.000000e+00> : vector<128x128xf32>
    %89 = tpu.matmul %86, %88, %cst_98 {dimension_numbers = #tpu.dot_dimension_numbers<[1], [0], [0], [1], [0, 0, 1, 1], [], []>} : vector<128x4xf32>, vector<4x128xf32>, vector<128x128xf32> -> vector<128x128xf32>
    %90 = arith.addf %84, %89 : vector<128x128xf32>
    %c0_99 = arith.constant 0 : index
    %c0_100 = arith.constant 0 : index
    %c32_101 = arith.constant 32 : index
    %c0_102 = arith.constant 0 : index
    %91 = vector.load %arg3[%c0_99, %c0_100, %c32_101, %c0_102] : memref<1x1x176x4xf32, #tpu.memory_space<vmem>>, vector<1x1x128x4xf32>
    %92 = vector.shape_cast %91 : vector<1x1x128x4xf32> to vector<128x4xf32>
    %c15 = arith.constant 15 : index
    %c0_103 = arith.constant 0 : index
    %c0_104 = arith.constant 0 : index
    %93 = vector.load %arg5[%c15, %c0_103, %c0_104] : memref<27x4x128xf32, #tpu.memory_space<vmem>>, vector<1x4x128xf32>
    %94 = vector.shape_cast %93 : vector<1x4x128xf32> to vector<4x128xf32>
    %cst_105 = arith.constant dense<0.000000e+00> : vector<128x128xf32>
    %95 = tpu.matmul %92, %94, %cst_105 {dimension_numbers = #tpu.dot_dimension_numbers<[1], [0], [0], [1], [0, 0, 1, 1], [], []>} : vector<128x4xf32>, vector<4x128xf32>, vector<128x128xf32> -> vector<128x128xf32>
    %96 = arith.addf %90, %95 : vector<128x128xf32>
    %c0_106 = arith.constant 0 : index
    %c0_107 = arith.constant 0 : index
    %c33_108 = arith.constant 33 : index
    %c0_109 = arith.constant 0 : index
    %97 = vector.load %arg3[%c0_106, %c0_107, %c33_108, %c0_109] : memref<1x1x176x4xf32, #tpu.memory_space<vmem>>, vector<1x1x128x4xf32>
    %98 = vector.shape_cast %97 : vector<1x1x128x4xf32> to vector<128x4xf32>
    %c16_110 = arith.constant 16 : index
    %c0_111 = arith.constant 0 : index
    %c0_112 = arith.constant 0 : index
    %99 = vector.load %arg5[%c16_110, %c0_111, %c0_112] : memref<27x4x128xf32, #tpu.memory_space<vmem>>, vector<1x4x128xf32>
    %100 = vector.shape_cast %99 : vector<1x4x128xf32> to vector<4x128xf32>
    %cst_113 = arith.constant dense<0.000000e+00> : vector<128x128xf32>
    %101 = tpu.matmul %98, %100, %cst_113 {dimension_numbers = #tpu.dot_dimension_numbers<[1], [0], [0], [1], [0, 0, 1, 1], [], []>} : vector<128x4xf32>, vector<4x128xf32>, vector<128x128xf32> -> vector<128x128xf32>
    %102 = arith.addf %96, %101 : vector<128x128xf32>
    %c0_114 = arith.constant 0 : index
    %c0_115 = arith.constant 0 : index
    %c34_116 = arith.constant 34 : index
    %c0_117 = arith.constant 0 : index
    %103 = vector.load %arg3[%c0_114, %c0_115, %c34_116, %c0_117] : memref<1x1x176x4xf32, #tpu.memory_space<vmem>>, vector<1x1x128x4xf32>
    %104 = vector.shape_cast %103 : vector<1x1x128x4xf32> to vector<128x4xf32>
    %c17_118 = arith.constant 17 : index
    %c0_119 = arith.constant 0 : index
    %c0_120 = arith.constant 0 : index
    %105 = vector.load %arg5[%c17_118, %c0_119, %c0_120] : memref<27x4x128xf32, #tpu.memory_space<vmem>>, vector<1x4x128xf32>
    %106 = vector.shape_cast %105 : vector<1x4x128xf32> to vector<4x128xf32>
    %cst_121 = arith.constant dense<0.000000e+00> : vector<128x128xf32>
    %107 = tpu.matmul %104, %106, %cst_121 {dimension_numbers = #tpu.dot_dimension_numbers<[1], [0], [0], [1], [0, 0, 1, 1], [], []>} : vector<128x4xf32>, vector<4x128xf32>, vector<128x128xf32> -> vector<128x128xf32>
    %108 = arith.addf %102, %107 : vector<128x128xf32>
    %c0_122 = arith.constant 0 : index
    %c0_123 = arith.constant 0 : index
    %c0_124 = arith.constant 0 : index
    %c0_125 = arith.constant 0 : index
    %109 = vector.load %arg4[%c0_122, %c0_123, %c0_124, %c0_125] : memref<1x1x176x4xf32, #tpu.memory_space<vmem>>, vector<1x1x128x4xf32>
    %110 = vector.shape_cast %109 : vector<1x1x128x4xf32> to vector<128x4xf32>
    %c18_126 = arith.constant 18 : index
    %c0_127 = arith.constant 0 : index
    %c0_128 = arith.constant 0 : index
    %111 = vector.load %arg5[%c18_126, %c0_127, %c0_128] : memref<27x4x128xf32, #tpu.memory_space<vmem>>, vector<1x4x128xf32>
    %112 = vector.shape_cast %111 : vector<1x4x128xf32> to vector<4x128xf32>
    %cst_129 = arith.constant dense<0.000000e+00> : vector<128x128xf32>
    %113 = tpu.matmul %110, %112, %cst_129 {dimension_numbers = #tpu.dot_dimension_numbers<[1], [0], [0], [1], [0, 0, 1, 1], [], []>} : vector<128x4xf32>, vector<4x128xf32>, vector<128x128xf32> -> vector<128x128xf32>
    %114 = arith.addf %108, %113 : vector<128x128xf32>
    %c0_130 = arith.constant 0 : index
    %c0_131 = arith.constant 0 : index
    %c1_132 = arith.constant 1 : index
    %c0_133 = arith.constant 0 : index
    %115 = vector.load %arg4[%c0_130, %c0_131, %c1_132, %c0_133] : memref<1x1x176x4xf32, #tpu.memory_space<vmem>>, vector<1x1x128x4xf32>
    %116 = vector.shape_cast %115 : vector<1x1x128x4xf32> to vector<128x4xf32>
    %c19 = arith.constant 19 : index
    %c0_134 = arith.constant 0 : index
    %c0_135 = arith.constant 0 : index
    %117 = vector.load %arg5[%c19, %c0_134, %c0_135] : memref<27x4x128xf32, #tpu.memory_space<vmem>>, vector<1x4x128xf32>
    %118 = vector.shape_cast %117 : vector<1x4x128xf32> to vector<4x128xf32>
    %cst_136 = arith.constant dense<0.000000e+00> : vector<128x128xf32>
    %119 = tpu.matmul %116, %118, %cst_136 {dimension_numbers = #tpu.dot_dimension_numbers<[1], [0], [0], [1], [0, 0, 1, 1], [], []>} : vector<128x4xf32>, vector<4x128xf32>, vector<128x128xf32> -> vector<128x128xf32>
    %120 = arith.addf %114, %119 : vector<128x128xf32>
    %c0_137 = arith.constant 0 : index
    %c0_138 = arith.constant 0 : index
    %c2_139 = arith.constant 2 : index
    %c0_140 = arith.constant 0 : index
    %121 = vector.load %arg4[%c0_137, %c0_138, %c2_139, %c0_140] : memref<1x1x176x4xf32, #tpu.memory_space<vmem>>, vector<1x1x128x4xf32>
    %122 = vector.shape_cast %121 : vector<1x1x128x4xf32> to vector<128x4xf32>
    %c20 = arith.constant 20 : index
    %c0_141 = arith.constant 0 : index
    %c0_142 = arith.constant 0 : index
    %123 = vector.load %arg5[%c20, %c0_141, %c0_142] : memref<27x4x128xf32, #tpu.memory_space<vmem>>, vector<1x4x128xf32>
    %124 = vector.shape_cast %123 : vector<1x4x128xf32> to vector<4x128xf32>
    %cst_143 = arith.constant dense<0.000000e+00> : vector<128x128xf32>
    %125 = tpu.matmul %122, %124, %cst_143 {dimension_numbers = #tpu.dot_dimension_numbers<[1], [0], [0], [1], [0, 0, 1, 1], [], []>} : vector<128x4xf32>, vector<4x128xf32>, vector<128x128xf32> -> vector<128x128xf32>
    %126 = arith.addf %120, %125 : vector<128x128xf32>
    %c0_144 = arith.constant 0 : index
    %c0_145 = arith.constant 0 : index
    %c16_146 = arith.constant 16 : index
    %c0_147 = arith.constant 0 : index
    %127 = vector.load %arg4[%c0_144, %c0_145, %c16_146, %c0_147] : memref<1x1x176x4xf32, #tpu.memory_space<vmem>>, vector<1x1x128x4xf32>
    %128 = vector.shape_cast %127 : vector<1x1x128x4xf32> to vector<128x4xf32>
    %c21 = arith.constant 21 : index
    %c0_148 = arith.constant 0 : index
    %c0_149 = arith.constant 0 : index
    %129 = vector.load %arg5[%c21, %c0_148, %c0_149] : memref<27x4x128xf32, #tpu.memory_space<vmem>>, vector<1x4x128xf32>
    %130 = vector.shape_cast %129 : vector<1x4x128xf32> to vector<4x128xf32>
    %cst_150 = arith.constant dense<0.000000e+00> : vector<128x128xf32>
    %131 = tpu.matmul %128, %130, %cst_150 {dimension_numbers = #tpu.dot_dimension_numbers<[1], [0], [0], [1], [0, 0, 1, 1], [], []>} : vector<128x4xf32>, vector<4x128xf32>, vector<128x128xf32> -> vector<128x128xf32>
    %132 = arith.addf %126, %131 : vector<128x128xf32>
    %c0_151 = arith.constant 0 : index
    %c0_152 = arith.constant 0 : index
    %c17_153 = arith.constant 17 : index
    %c0_154 = arith.constant 0 : index
    %133 = vector.load %arg4[%c0_151, %c0_152, %c17_153, %c0_154] : memref<1x1x176x4xf32, #tpu.memory_space<vmem>>, vector<1x1x128x4xf32>
    %134 = vector.shape_cast %133 : vector<1x1x128x4xf32> to vector<128x4xf32>
    %c22 = arith.constant 22 : index
    %c0_155 = arith.constant 0 : index
    %c0_156 = arith.constant 0 : index
    %135 = vector.load %arg5[%c22, %c0_155, %c0_156] : memref<27x4x128xf32, #tpu.memory_space<vmem>>, vector<1x4x128xf32>
    %136 = vector.shape_cast %135 : vector<1x4x128xf32> to vector<4x128xf32>
    %cst_157 = arith.constant dense<0.000000e+00> : vector<128x128xf32>
    %137 = tpu.matmul %134, %136, %cst_157 {dimension_numbers = #tpu.dot_dimension_numbers<[1], [0], [0], [1], [0, 0, 1, 1], [], []>} : vector<128x4xf32>, vector<4x128xf32>, vector<128x128xf32> -> vector<128x128xf32>
    %138 = arith.addf %132, %137 : vector<128x128xf32>
    %c0_158 = arith.constant 0 : index
    %c0_159 = arith.constant 0 : index
    %c18_160 = arith.constant 18 : index
    %c0_161 = arith.constant 0 : index
    %139 = vector.load %arg4[%c0_158, %c0_159, %c18_160, %c0_161] : memref<1x1x176x4xf32, #tpu.memory_space<vmem>>, vector<1x1x128x4xf32>
    %140 = vector.shape_cast %139 : vector<1x1x128x4xf32> to vector<128x4xf32>
    %c23 = arith.constant 23 : index
    %c0_162 = arith.constant 0 : index
    %c0_163 = arith.constant 0 : index
    %141 = vector.load %arg5[%c23, %c0_162, %c0_163] : memref<27x4x128xf32, #tpu.memory_space<vmem>>, vector<1x4x128xf32>
    %142 = vector.shape_cast %141 : vector<1x4x128xf32> to vector<4x128xf32>
    %cst_164 = arith.constant dense<0.000000e+00> : vector<128x128xf32>
    %143 = tpu.matmul %140, %142, %cst_164 {dimension_numbers = #tpu.dot_dimension_numbers<[1], [0], [0], [1], [0, 0, 1, 1], [], []>} : vector<128x4xf32>, vector<4x128xf32>, vector<128x128xf32> -> vector<128x128xf32>
    %144 = arith.addf %138, %143 : vector<128x128xf32>
    %c0_165 = arith.constant 0 : index
    %c0_166 = arith.constant 0 : index
    %c32_167 = arith.constant 32 : index
    %c0_168 = arith.constant 0 : index
    %145 = vector.load %arg4[%c0_165, %c0_166, %c32_167, %c0_168] : memref<1x1x176x4xf32, #tpu.memory_space<vmem>>, vector<1x1x128x4xf32>
    %146 = vector.shape_cast %145 : vector<1x1x128x4xf32> to vector<128x4xf32>
    %c24 = arith.constant 24 : index
    %c0_169 = arith.constant 0 : index
    %c0_170 = arith.constant 0 : index
    %147 = vector.load %arg5[%c24, %c0_169, %c0_170] : memref<27x4x128xf32, #tpu.memory_space<vmem>>, vector<1x4x128xf32>
    %148 = vector.shape_cast %147 : vector<1x4x128xf32> to vector<4x128xf32>
    %cst_171 = arith.constant dense<0.000000e+00> : vector<128x128xf32>
    %149 = tpu.matmul %146, %148, %cst_171 {dimension_numbers = #tpu.dot_dimension_numbers<[1], [0], [0], [1], [0, 0, 1, 1], [], []>} : vector<128x4xf32>, vector<4x128xf32>, vector<128x128xf32> -> vector<128x128xf32>
    %150 = arith.addf %144, %149 : vector<128x128xf32>
    %c0_172 = arith.constant 0 : index
    %c0_173 = arith.constant 0 : index
    %c33_174 = arith.constant 33 : index
    %c0_175 = arith.constant 0 : index
    %151 = vector.load %arg4[%c0_172, %c0_173, %c33_174, %c0_175] : memref<1x1x176x4xf32, #tpu.memory_space<vmem>>, vector<1x1x128x4xf32>
    %152 = vector.shape_cast %151 : vector<1x1x128x4xf32> to vector<128x4xf32>
    %c25 = arith.constant 25 : index
    %c0_176 = arith.constant 0 : index
    %c0_177 = arith.constant 0 : index
    %153 = vector.load %arg5[%c25, %c0_176, %c0_177] : memref<27x4x128xf32, #tpu.memory_space<vmem>>, vector<1x4x128xf32>
    %154 = vector.shape_cast %153 : vector<1x4x128xf32> to vector<4x128xf32>
    %cst_178 = arith.constant dense<0.000000e+00> : vector<128x128xf32>
    %155 = tpu.matmul %152, %154, %cst_178 {dimension_numbers = #tpu.dot_dimension_numbers<[1], [0], [0], [1], [0, 0, 1, 1], [], []>} : vector<128x4xf32>, vector<4x128xf32>, vector<128x128xf32> -> vector<128x128xf32>
    %156 = arith.addf %150, %155 : vector<128x128xf32>
    %c0_179 = arith.constant 0 : index
    %c0_180 = arith.constant 0 : index
    %c34_181 = arith.constant 34 : index
    %c0_182 = arith.constant 0 : index
    %157 = vector.load %arg4[%c0_179, %c0_180, %c34_181, %c0_182] : memref<1x1x176x4xf32, #tpu.memory_space<vmem>>, vector<1x1x128x4xf32>
    %158 = vector.shape_cast %157 : vector<1x1x128x4xf32> to vector<128x4xf32>
    %c26 = arith.constant 26 : index
    %c0_183 = arith.constant 0 : index
    %c0_184 = arith.constant 0 : index
    %159 = vector.load %arg5[%c26, %c0_183, %c0_184] : memref<27x4x128xf32, #tpu.memory_space<vmem>>, vector<1x4x128xf32>
    %160 = vector.shape_cast %159 : vector<1x4x128xf32> to vector<4x128xf32>
    %cst_185 = arith.constant dense<0.000000e+00> : vector<128x128xf32>
    %161 = tpu.matmul %158, %160, %cst_185 {dimension_numbers = #tpu.dot_dimension_numbers<[1], [0], [0], [1], [0, 0, 1, 1], [], []>} : vector<128x4xf32>, vector<4x128xf32>, vector<128x128xf32> -> vector<128x128xf32>
    %162 = arith.addf %156, %161 : vector<128x128xf32>
    %c0_186 = arith.constant 0 : index
    %c0_187 = arith.constant 0 : index
    %163 = vector.load %arg6[%c0_186, %c0_187] : memref<1x128xf32, #tpu.memory_space<vmem>>, vector<1x128xf32>
    %164 = vector.broadcast %163 : vector<1x128xf32> to vector<128x128xf32>
    %165 = arith.addf %162, %164 : vector<128x128xf32>
    %cst_188 = arith.constant 0.000000e+00 : f32
    %166 = vector.broadcast %cst_188 : f32 to vector<128x128xf32>
    %167 = arith.maximumf %165, %166 : vector<128x128xf32>
    %c0_189 = arith.constant 0 : index
    %c0_190 = arith.constant 0 : index
    %c0_191 = arith.constant 0 : index
    %c0_192 = arith.constant 0 : index
    %168 = vector.load %arg7[%c0_189, %c0_190, %c0_191, %c0_192] : memref<1x1x128x128xf32, #tpu.memory_space<vmem>>, vector<1x1x128x128xf32>
    %169 = vector.shape_cast %168 : vector<1x1x128x128xf32> to vector<128x128xf32>
    %170 = vector.shape_cast %167 : vector<128x128xf32> to vector<1x1x128x128xf32>
    tpu.vector_store %arg7[%c0_189, %c0_190, %c0_191, %c0_192], %170 {strides = array<i32>} : memref<1x1x128x128xf32, #tpu.memory_space<vmem>>, vector<1x1x128x128xf32>,
    return
  }
  func.func @transform_0(%arg0: i32, %arg1: i32) -> (i32, i32, i32, i32) {
    %c0_i32 = arith.constant 0 : i32
    %0 = arith.addi %arg1, %c0_i32 : i32
    %c0_i32_0 = arith.constant 0 : i32
    %c0_i32_1 = arith.constant 0 : i32
    %c0_i32_2 = arith.constant 0 : i32
    return %arg0, %0, %c0_i32_0, %c0_i32_1 : i32, i32, i32, i32
  }
  func.func @transform_1(%arg0: i32, %arg1: i32) -> (i32, i32, i32, i32) {
    %c1_i32 = arith.constant 1 : i32
    %0 = arith.addi %arg1, %c1_i32 : i32
    %c0_i32 = arith.constant 0 : i32
    %c0_i32_0 = arith.constant 0 : i32
    %c0_i32_1 = arith.constant 0 : i32
    return %arg0, %0, %c0_i32, %c0_i32_0 : i32, i32, i32, i32
  }
  func.func @transform_2(%arg0: i32, %arg1: i32) -> (i32, i32, i32, i32) {
    %c2_i32 = arith.constant 2 : i32
    %0 = arith.addi %arg1, %c2_i32 : i32
    %c0_i32 = arith.constant 0 : i32
    %c0_i32_0 = arith.constant 0 : i32
    %c0_i32_1 = arith.constant 0 : i32
    return %arg0, %0, %c0_i32, %c0_i32_0 : i32, i32, i32, i32
  }
  func.func @transform_3(%arg0: i32, %arg1: i32) -> (i32, i32, i32) {
    %c0_i32 = arith.constant 0 : i32
    %c0_i32_0 = arith.constant 0 : i32
    %c0_i32_1 = arith.constant 0 : i32
    %c0_i32_2 = arith.constant 0 : i32
    return %c0_i32, %c0_i32_0, %c0_i32_1 : i32, i32, i32
  }
  func.func @transform_4(%arg0: i32, %arg1: i32) -> (i32, i32) {
    %c0_i32 = arith.constant 0 : i32
    %c0_i32_0 = arith.constant 0 : i32
    %c0_i32_1 = arith.constant 0 : i32
    return %c0_i32, %c0_i32_0 : i32, i32
  }
  func.func @transform_5(%arg0: i32, %arg1: i32) -> (i32, i32, i32, i32) {
    %c0_i32 = arith.constant 0 : i32
    %c0_i32_0 = arith.constant 0 : i32
    %c0_i32_1 = arith.constant 0 : i32
    return %arg0, %arg1, %c0_i32, %c0_i32_0 : i32, i32, i32, i32
  }
}

</mosaic_0001>

<bundles_post_ra>
// kernel: tpu_custom_call.1
= control target key start
LH: loop header
LB: loop body
LE: loop exit
PB: predicated region body
PF: predicated region fallthrough
CT: control target
= control target key end

     0   :  { %s11235_s0 = inlined_call_operand.hbm [shape: f32[2,8,176,4], index: 0, kind: input, shape index: {}]   ;;  %s11236_s1 = inlined_call_operand.hbm [shape: f32[2,8,176,4], index: 1, kind: input, shape index: {}]   ;;  %s11237_s2 = inlined_call_operand.hbm [shape: f32[2,8,176,4], index: 2, kind: input, shape index: {}]   ;;  %s11238_s3 = inlined_call_operand.hbm [shape: f32[27,4,128], index: 3, kind: input, shape index: {}]   ;;  %s11239_s4 = inlined_call_operand.hbm [shape: f32[1,128], index: 4, kind: input, shape index: {}]   ;;  %s11240_s5 = inlined_call_operand.hbm [shape: f32[2,6,128,128], index: 5, kind: output, shape index: {}]  }
   0x1   :  { %11274 = sst [smem:[#allocation34_spill]] %s11235_s0 }
   0x2   :  { %11275 = sst [smem:[#allocation35_spill]] %s11236_s1 }
   0x3   :  { %11276 = sst [smem:[#allocation36_spill]] %s11237_s2 }
   0x4   :  { %11277 = sst [smem:[#allocation37_spill]] %s11238_s3 }
   0x5   :  { %11278 = sst [smem:[#allocation38_spill]] %s11239_s4 }
   0x6   :  { %11279 = sst [smem:[#allocation39_spill]] %s11240_s5 }
   0x7   :  { %10 = vsyncpa [#allocation3], 0 }
   0x8   :  { %12 = vsyncpa [#allocation3 + $0x1], 0 }
   0x9   :  { %13 = vsyncpa [#allocation6], 0 }
   0xa   :  { %15 = vsyncpa [#allocation6 + $0x1], 0 }
   0xb   :  { %16 = vsyncpa [#allocation9], 0 }
   0xc   :  { %17 = vsyncpa [#allocation4], 0 }
   0xd   :  { %19 = vsyncpa [#allocation4 + $0x1], 0  ;;  %s9371_s18 = smov 0   ;;  %s9373_s19 = smov 0  }
   0xe   :  { %s9375_s20 = smov 0   ;;  %s9377_s21 = smov 0  }
   0xf   :  { %s9379_s22 = smov 0   ;;  %s9381_s23 = smov 0  }
  0x10   :  { %s9383_s24 = smov 0   ;;  %s9385_s25 = smov 0  }
  0x11   :  { %s9387_s26 = smov 0   ;;  %s9389_s27 = smov 0  }
  0x12   :  { %s9391_s28 = smov 0   ;;  %s9393_s29 = smov 0  }
  0x13   :  { %s9395_s30 = smov 0   ;;  %s9397_s6 = smov 0  }
  0x14 LB: > { %11280 = sst [smem:[#allocation17_spill]] %s9275_s18  ;;  %s9442_s7 = sadd.s32 4294967295, %s9327_s6   ;;  %s9327_s6 = sphi %s9397_s6, %s25_s6   ;;  %s9323_s30 = sphi %s9395_s30, %s11358_s30   ;;  %s9319_s29 = sphi %s9393_s29, %s11357_s29   ;;  %s9315_s28 = sphi %s9391_s28, %s11356_s28   ;;  %s9311_s27 = sphi %s9389_s27, %s11365_s27   ;;  %s9307_s26 = sphi %s9387_s26, %s11364_s26   ;;  %s9303_s25 = sphi %s9385_s25, %s11363_s25   ;;  %s9299_s24 = sphi %s9383_s24, %s11362_s24   ;;  %s9295_s23 = sphi %s9381_s23, %s11361_s23   ;;  %s9291_s22 = sphi %s9379_s22, %s11360_s22   ;;  %s9287_s21 = sphi %s9377_s21, %s11353_s21   ;;  %s9283_s20 = sphi %s9375_s20, %s11359_s20   ;;  %s9279_s19 = sphi %s9373_s19, %s11352_s19   ;;  %s9275_s18 = sphi %s9371_s18, %s11351_s18  }
  0x15   : > { %11281 = sst [smem:[#allocation18_spill]] %s9279_s19  ;;  %p6793_p0 = scmp.ge.s32.totalorder %s9327_s6, 1 }
  0x16   : > { %11282 = sst [smem:[#allocation19_spill]] %s9283_s20  ;;  %p11241_p1 = scmp.eq.s32.totalorder %s9442_s7, 0 }
  0x17   : > { %11283 = sst [smem:[#allocation20_spill]] %s9291_s22  ;;  %p200_p3 = scmp.lt.s32.totalorder %s9327_s6, 13 }
  0x18   : > { %11284 = sst [smem:[#allocation21_spill]] %s9311_s27  ;;  %s9329_s9 = smov [#allocation8]  }
  0x19   : > { %11285 = sst [smem:[#allocation22_spill]] %s9315_s28  ;;  %p9448_p4 = pnand %p6793_p0, %p200_p3 }
  0x1a   : > { %11286 = sst [smem:[#allocation23_spill]] %s9319_s29  ;;  %s212_s10 = sshll.u32 %s9329_s9, 4  ;;  %s213_s10 = int_to_ptr.vmem [resolvable:$true] %s212_s10 }
  0x1b   : > { %11287 = sst [smem:[#allocation24_spill]] %s9323_s30  ;;  %p8873_p5 = pneg %p9448_p4 }
  0x1c   : > { %s11288_s8 = scalar_select %p9448_p4, 1, 0 }
  0x1d   : > { %p9456_p6 = pnand %p8873_p5, %p11241_p1  ;;  %s11291_s3 = sld [smem:[#allocation37_spill]] }
  0x1e   : > { %11289 = sst [smem:[#allocation25_spill]] %s11288_s8 }
  0x1f   : > { %p11254_p8 = pneg %p9456_p6 }
  0x23   : > { %s9021_s14 = scalar_lea.hbm %s11291_s3, 1728 }
  0x24   : > { %p9022_p7 = scmp.ne.s32.totalorder %s11291_s3, %s9021_s14  ;;  %p9028_p11 = scmp.lt.u32.totalorder %s9021_s14, %s11291_s3 }
  0x26   : > { %p9024_p9 = pnand %p11254_p8, %p9022_p7 }
  0x28   : > { %p9025_p10 = pneg %p9024_p9 }
  0x2a   : > { %p9030_p12 = pnand %p9028_p11, %p9025_p10 }
  0x2c   : > { %9033 = shalt.err (!%p9030_p12)
}
  0x2d   : > { %s9034_s12 = scalar_lea.vmem %s213_s10, 1728  ;;  %p9042_p5 = scmp.lt.s32.totalorder %s213_s10, %s213_s10 }
  0x2e   : > { %p9035_p13 = scmp.ne.s32.totalorder %s213_s10, %s9034_s12  ;;  %p9043_p2 = scmp.lt.s32.totalorder %s9034_s12, %s9034_s12 }
  0x30   : > { %p9037_p0 = pnand %p9035_p13, %p11254_p8  ;;  %p9044_p1 = por %p9043_p2, %p9042_p5 }
  0x32   : > { %p9038_p3 = pneg %p9037_p0 }
  0x34   : > { %p9045_p4 = pnand %p9044_p1, %p9038_p3 }
  0x36   : > { %9048 = shalt.err (!%p9045_p4)
}
  0x37   : > { %s9330_s13 = smov 64   ;;  %s9331_s14 = smov 4  }
  0x38   : > { %8876 = dma.hbm_to_vmem [thread:$0]  (!%p9456_p6), %s11291_s3, 1728, %s213_s10, [#allocation9], %s9330_s13, %s9330_s13, %s9331_s14  }
  0x39   : > { %s34_s17 = sadd.s32 1, %s9319_s29  ;;  %s37_s9 = sadd.s32 1, %s9323_s30 }
  0x3a   : > { %p35_p1 = scmp.ge.s32.totalorder %s34_s17, 6  ;;  %p11253_p2 = scmp.eq.s32.totalorder %s9327_s6, 0 }
  0x3b   : > { %s76_s12 = sadd.s32 1, %s9295_s23  ;;  %p83_p4 = scmp.ne.s32.totalorder %s9295_s23, %s9291_s22 }
  0x3c   : > { %s9488_s5 = scalar_select %p35_p1, 0, %s34_s17  }
  0x3d   : > { %s11367_s9 = smov (!%p35_p1, %s37_s9), %s9323_s30  ;;  %p9496_p9 = por %p83_p4, %p11253_p2 }
  0x3e   : > { %11292 = sst [smem:[#allocation26_spill]] %s9488_s5  ;;  %s70_s28 = sadd.s32 1, %s9488_s5 }
  0x3f   : > { %p39_p7 = scmp.ge.s32.totalorder %s11367_s9, 2  ;;  %s72_s10 = ssub.s32 %s34_s17, %s70_s28 }
  0x40   : > { %p89_p10 = scmp.ne.s32.totalorder %s9291_s22, %s9287_s21  ;;  %p11295_p11 = scmp.eq.s32.totalorder %s9442_s7, 0 }
  0x41   : > { %s11369_s9 = smov (%p39_p7, %s11367_s9), 0  ;;  %s99_s15 = sadd.s32 2, %s9319_s29 }
  0x42   : > { %11294 = sst [smem:[#allocation27_spill]] %s11369_s9  ;;  %p9506_p12 = por %p89_p10, %p11295_p11 }
  0x43   : > { %s9513_s16 = ssub.s32 %s9323_s30, %s11369_s9  ;;  %s100_s28 = sadd.s32 2, %s9488_s5 }
  0x44   : > { %s11296_s14 = scalar_select %p9506_p12, 1, 0 }
  0x45   : > { %s73_s17 = sor.u32 %s72_s10, %s9513_s16  ;;  %s102_s27 = ssub.s32 %s99_s15, %s100_s28 }
  0x46   : > { %11297 = sst [smem:[#allocation28_spill]] %s11296_s14  ;;  %p74_p13 = scmp.eq.s32.totalorder %s73_s17, 0 }
  0x47   : > { %s103_s21 = sor.u32 %s102_s27, %s9513_s16  ;;  %p11252_p3 = scmp.lt.s32.totalorder %s9327_s6, 12 }
  0x48   : > { %p9518_p0 = scmp.eq.s32.totalorder %s103_s21, 0  ;;  %s8849_s14 = smul.u32 22, %s9319_s29 }
  0x49   : > { %s9524_s22 = scalar_select %p74_p13, %s9295_s23, %s76_s12  }
  0x4a   : > { %s11298_s3 = scalar_select %p9518_p0, 1, 0 }
  0x4b   : > { %s8850_s8 = smul.u32 176, %s9323_s30  ;;  %s260_s9 = sand.u32 1, %s9327_s6  }
  0x4c   : > { %s262_s2 = sand.u32 1, %s9295_s23   ;;  %s11299_s1 = sld [smem:[#allocation35_spill]] }
  0x4d   : > { %s247_s18 = sadd.s32 %s8850_s8, %s8849_s14  ;;  %s8851_s20 = smul.u32 176, %s262_s2 }
  0x4e   : > { %s9530_s19 = sshll.u32 %s247_s18, 7  ;;  %p9540_p5 = pnand %p11252_p3, %p9496_p9 }
  0x4f   : > { %s264_s18 = scalar_lea.vmem [#allocation5], %s8851_s20  ;;  %s9548_s2 = scalar_lea.sflag [#allocation6], %s260_s9 }
  0x50   : > { %s274_s8 = sshll.u32 %s264_s18, 4  ;;  %p9051_p4 = pneg %p9540_p5  ;;  %s9546_s8 = int_to_ptr.vmem [resolvable:$true] %s274_s8 }
  0x52   : > { %s6677_s27 = scalar_lea.hbm %s11299_s1, %s9530_s19  ;;  %s9054_s21 = scalar_lea.hbm %s11299_s1, 45056 }
  0x53   : > { %s9544_s12 = scalar_lea.hbm %s6677_s27, 2816  ;;  %s9079_s14 = scalar_lea.hbm %s6677_s27, 5632 }
  0x54   : > { %p9050_p1 = scmp.ne.s32.totalorder %s9544_s12, %s9079_s14  ;;  %p9055_p10 = scmp.lt.u32.totalorder %s9544_s12, %s11299_s1 }
  0x55   : > { %p9056_p11 = scmp.lt.u32.totalorder %s9054_s21, %s9079_s14  ;;  %p9058_p3 = scmp.lt.u32.totalorder %s9079_s14, %s9544_s12 }
  0x56   : > { %p9052_p7 = pnand %p9051_p4, %p9050_p1 }
  0x57   : > { %p9057_p13 = por %p9056_p11, %p9055_p10 }
  0x58   : > { %p9053_p9 = pneg %p9052_p7 }
  0x59   : > { %p9059_p2 = por %p9058_p3, %p9057_p13 }
  0x5b   : > { %p9060_p8 = pnand %p9059_p2, %p9053_p9 }
  0x5d   : > { %9063 = shalt.err (!%p9060_p8)
}
  0x5e   : > { %s9064_s20 = scalar_lea.vmem %s9546_s8, 2816  ;;  %s9332_s9 = smov [#allocation5]  }
  0x5f   : > { %p9065_p1 = scmp.ne.s32.totalorder %s9546_s8, %s9064_s20  ;;  %s9069_s27 = sshll.u32 %s9332_s9, 4  ;;  %s9070_s27 = int_to_ptr.vmem [resolvable:$false] %s9069_s27 }
  0x60   : > { %s9071_s18 = scalar_lea.vmem %s9070_s27, 5632  ;;  %p9072_p0 = scmp.lt.s32.totalorder %s9546_s8, %s9070_s27 }
  0x61   : > { %p9067_p7 = pnand %p9065_p1, %p9051_p4  ;;  %p9073_p10 = scmp.lt.s32.totalorder %s9071_s18, %s9064_s20 }
  0x63   : > { %p9068_p12 = pneg %p9067_p7  ;;  %p9074_p11 = por %p9073_p10, %p9072_p0 }
  0x65   : > { %p9075_p3 = pnand %p9074_p11, %p9068_p12 }
  0x67   : > { %9078 = shalt.err (!%p9075_p3)
}
  0x68   : > { %s11256_s14 = smov 128   ;;  %s11258_s13 = smov 8  }
  0x69   : > { %8886 = dma.hbm_to_vmem [thread:$0]  (!%p9540_p5), %s9544_s12, 2816, %s9546_s8, %s9548_s2, %s11256_s14, %s11256_s14, %s11258_s13  }
  0x6a   : > { %s9335_s17 = smov [#allocation10]   ;;  %s11301_s4 = sld [smem:[#allocation38_spill]] }
  0x6b   : > { %s226_s21 = sshll.u32 %s9335_s17, 4  ;;  %p11302_p2 = pneg %p9456_p6  ;;  %s227_s21 = int_to_ptr.vmem [resolvable:$true] %s226_s21 }
  0x70   : > { %s9080_s20 = scalar_lea.hbm %s11301_s4, 16 }
  0x71   : > { %p9081_p8 = scmp.ne.s32.totalorder %s11301_s4, %s9080_s20  ;;  %p9087_p4 = scmp.lt.u32.totalorder %s9080_s20, %s11301_s4 }
  0x73   : > { %p9083_p12 = pnand %p9081_p8, %p11302_p2 }
  0x75   : > { %p9084_p0 = pneg %p9083_p12 }
  0x77   : > { %p9089_p5 = pnand %p9087_p4, %p9084_p0 }
  0x79   : > { %9092 = shalt.err (!%p9089_p5)
}
  0x7a   : > { %s9093_s12 = scalar_lea.vmem %s227_s21, 16  ;;  %p11303_p13 = pmov %p11302_p2 }
  0x7b   : > { %p9094_p9 = scmp.ne.s32.totalorder %s227_s21, %s9093_s12  ;;  %s9100_s8 = scalar_lea.vmem %s227_s21, 32 }
  0x7c   : > { %p9101_p10 = scmp.lt.s32.totalorder %s227_s21, %s227_s21  ;;  %p9102_p11 = scmp.lt.s32.totalorder %s9100_s8, %s9093_s12 }
  0x7d   : > { %p9096_p1 = pnand %p9094_p9, %p11303_p13 }
  0x7e   : > { %p9103_p3 = por %p9102_p11, %p9101_p10 }
  0x7f   : > { %p9097_p7 = pneg %p9096_p1 }
  0x81   : > { %p9104_p2 = pnand %p9103_p3, %p9097_p7 }
  0x83   : > { %9107 = shalt.err (!%p9104_p2)
}
  0x84   : > { %8879 = dma.hbm_to_vmem [thread:$0]  (!%p9456_p6), %s11301_s4, 16, %s227_s21, [#allocation9]  }
  0x85   : > { %s6792_s11 = sadd.s32 4294967294, %s9327_s6   ;;  %s11304_s15 = ssub.s32 %s9319_s29, %s9488_s5 }
  0x86   : > { %s43_s20 = sor.u32 %s11304_s15, %s9513_s16  ;;  %s46_s9 = sadd.s32 1, %s9307_s26 }
  0x87   : > { %p44_p8 = scmp.eq.s32.totalorder %s43_s20, 0  ;;  %p53_p12 = scmp.ne.s32.totalorder %s9307_s26, %s9303_s25 }
  0x88   : > { %p59_p0 = scmp.ne.s32.totalorder %s9303_s25, %s9299_s24  ;;  %p11305_p4 = scmp.eq.s32.totalorder %s9327_s6, 0 }
  0x89   : > { %s9609_s27 = scalar_select %p44_p8, %s9307_s26, %s46_s9  }
  0x8a   : > { %p55_p5 = por %p11305_p4, %p53_p12  ;;  %p11306_p9 = scmp.eq.s32.totalorder %s9442_s7, 0 }
  0x8b   : > { %p11308_p1 = scmp.eq.s32.totalorder %s9442_s7, 11  ;;  %p193_p6 = scmp.eq.s32.totalorder %s6792_s11, 11 }
  0x8c   : > { %p9615_p13 = por %p11306_p9, %p59_p0  ;;  %s237_s16 = sand.u32 1, %s9307_s26  }
  0x8d   : > { %p9621_p7 = por %p11308_p1, %p53_p12  ;;  %s11310_s0 = sld [smem:[#allocation34_spill]] }
  0x8e   : > { %p9632_p10 = por %p193_p6, %p59_p0  ;;  %s8848_s10 = smul.u32 176, %s237_s16 }
  0x8f   : > { %s11309_s21 = scalar_select %p9621_p7, 1, 0 }
  0x90   : > { %s11311_s17 = scalar_select %p9632_p10, 1, 0 }
  0x91   : > { %p11312_p11 = scmp.lt.s32.totalorder %s9327_s6, 12  ;;  %s241_s11 = scalar_lea.vmem [#allocation2], %s8848_s10 }
  0x92   : > { %s250_s20 = sshll.u32 %s241_s11, 4  ;;  %s9644_s9 = scalar_lea.sflag [#allocation3], %s237_s16  ;;  %s9642_s20 = int_to_ptr.vmem [resolvable:$true] %s250_s20 }
  0x93   : > { %s9630_s8 = scalar_lea.hbm %s11310_s0, %s9530_s19  ;;  %p9638_p3 = pnand %p11312_p11, %p55_p5 }
  0x94   : > { %s9108_s18 = scalar_lea.hbm %s9630_s8, 2816  ;;  %s9113_s13 = scalar_lea.hbm %s11310_s0, 45056 }
  0x95   : > { %p9109_p2 = scmp.ne.s32.totalorder %s9630_s8, %s9108_s18  ;;  %p9110_p8 = pneg %p9638_p3 }
  0x96   : > { %p9114_p4 = scmp.lt.u32.totalorder %s9630_s8, %s11310_s0  ;;  %p9115_p5 = scmp.lt.u32.totalorder %s9113_s13, %s9108_s18 }
  0x97   : > { %p9111_p12 = pnand %p9110_p8, %p9109_p2  ;;  %p9117_p1 = scmp.lt.u32.totalorder %s9108_s18, %s9630_s8 }
  0x98   : > { %p9116_p9 = por %p9115_p5, %p9114_p4 }
  0x99   : > { %p9112_p0 = pneg %p9111_p12 }
  0x9a   : > { %p9118_p6 = por %p9117_p1, %p9116_p9 }
  0x9c   : > { %p9119_p11 = pnand %p9118_p6, %p9112_p0 }
  0x9e   : > { %9122 = shalt.err (!%p9119_p11)
}
  0x9f   : > { %s9123_s16 = scalar_lea.vmem %s9642_s20, 2816  ;;  %s9336_s14 = smov [#allocation2]  }
  0xa0   : > { %p9124_p2 = scmp.ne.s32.totalorder %s9642_s20, %s9123_s16  ;;  %s9128_s10 = sshll.u32 %s9336_s14, 4  ;;  %s9129_s10 = int_to_ptr.vmem [resolvable:$false] %s9128_s10 }
  0xa1   : > { %s9130_s1 = scalar_lea.vmem %s9129_s10, 5632  ;;  %p9131_p7 = scmp.lt.s32.totalorder %s9642_s20, %s9129_s10 }
  0xa2   : > { %p9126_p12 = pnand %p9124_p2, %p9110_p8  ;;  %p9132_p4 = scmp.lt.s32.totalorder %s9130_s1, %s9123_s16 }
  0xa4   : > { %p9127_p10 = pneg %p9126_p12  ;;  %p9133_p5 = por %p9132_p4, %p9131_p7 }
  0xa6   : > { %p9134_p9 = pnand %p9133_p5, %p9127_p10 }
  0xa8   : > { %9137 = shalt.err (!%p9134_p9)
}
  0xa9   : > { %s11314_s4 = smov 8   ;;  %s11315_s13 = smov 128  }
  0xaa   : > { %s11316_s11 = sld [smem:[#allocation19_spill]]  ;;  %s11317_s18 = sld [smem:[#allocation18_spill]] }
  0xab   : > { %s11318_s12 = sld [smem:[#allocation17_spill]]  ;;  %p11319_p10 = scmp.ne.s32.totalorder %s11298_s3, 0 }
  0xac   : > { %8883 = dma.hbm_to_vmem [thread:$0]  (!%p9638_p3), %s9630_s8, 2816, %s9642_s20, %s9644_s9, %s11315_s13, %s11315_s13, %s11314_s4  }
  0xad   : > { %p11320_p8 = scmp.eq.s32.totalorder %s9327_s6, 0  ;;  %s11321_s0 = sld [smem:[#allocation36_spill]] }
  0xae   : > { %p11322_p6 = scmp.eq.s32.totalorder %s9442_s7, 0  ;;  %p11324_p3 = scmp.lt.s32.totalorder %s9327_s6, 12 }
  0xb0   : > { %s106_s15 = sadd.s32 1, %s11316_s11  ;;  %p113_p7 = scmp.ne.s32.totalorder %s11316_s11, %s11317_s18 }
  0xb1   : > { %s9681_s16 = scalar_select %p11319_p10, %s11316_s11, %s106_s15  }
  0xb2   : > { %p115_p0 = por %p113_p7, %p11320_p8  ;;  %p119_p1 = scmp.ne.s32.totalorder %s11317_s18, %s11318_s12 }
  0xb3   : > { %s286_s14 = sand.u32 1, %s11316_s11   ;;  %s6686_s5 = scalar_lea.hbm %s11321_s0, %s9530_s19 }
  0xb4   : > { %p9694_p11 = por %p119_p1, %p11322_p6  ;;  %s8852_s29 = smul.u32 176, %s286_s14 }
  0xb5   : > { %p9700_p2 = pnand %p11324_p3, %p115_p0  ;;  %s9704_s3 = scalar_lea.hbm %s6686_s5, 5632 }
  0xb6   : > { %s11323_s30 = scalar_select %p9694_p11, 1, 0 }
  0xb7   : > { %s288_s20 = scalar_lea.vmem [#allocation7], %s8852_s29  ;;  %s9168_s9 = scalar_lea.hbm %s6686_s5, 8448 }
  0xb8   : > { %s298_s19 = sshll.u32 %s288_s20, 4  ;;  %p9139_p12 = scmp.ne.s32.totalorder %s9704_s3, %s9168_s9  ;;  %s9706_s19 = int_to_ptr.vmem [resolvable:$true] %s298_s19 }
  0xb9   : > { %p9140_p4 = pneg %p9700_p2  ;;  %s9143_s12 = scalar_lea.hbm %s11321_s0, 45056 }
  0xba   : > { %p9144_p7 = scmp.lt.u32.totalorder %s9704_s3, %s11321_s0  ;;  %p9145_p10 = scmp.lt.u32.totalorder %s9143_s12, %s9168_s9 }
  0xbb   : > { %p9141_p5 = pnand %p9140_p4, %p9139_p12  ;;  %p9147_p0 = scmp.lt.u32.totalorder %s9168_s9, %s9704_s3 }
  0xbc   : > { %p9146_p8 = por %p9145_p10, %p9144_p7 }
  0xbd   : > { %p9142_p9 = pneg %p9141_p5 }
  0xbe   : > { %p9148_p1 = por %p9147_p0, %p9146_p8 }
  0xc0   : > { %p9149_p6 = pnand %p9148_p1, %p9142_p9 }
  0xc2   : > { %9152 = shalt.err (!%p9149_p6)
}
  0xc3   : > { %s9153_s5 = scalar_lea.vmem %s9706_s19, 2816  ;;  %s9337_s29 = smov [#allocation7]  }
  0xc4   : > { %p9154_p3 = scmp.ne.s32.totalorder %s9706_s19, %s9153_s5  ;;  %s9158_s10 = sshll.u32 %s9337_s29, 4  ;;  %s9159_s10 = int_to_ptr.vmem [resolvable:$false] %s9158_s10 }
  0xc5   : > { %s9160_s1 = scalar_lea.vmem %s9159_s10, 5632  ;;  %p9161_p11 = scmp.lt.s32.totalorder %s9706_s19, %s9159_s10 }
  0xc6   : > { %p9156_p12 = pnand %p9154_p3, %p9140_p4  ;;  %p9162_p7 = scmp.lt.s32.totalorder %s9160_s1, %s9153_s5 }
  0xc8   : > { %p9157_p5 = pneg %p9156_p12  ;;  %p9163_p10 = por %p9162_p7, %p9161_p11 }
  0xca   : > { %p9164_p8 = pnand %p9163_p10, %p9157_p5 }
  0xcc   : > { %9167 = shalt.err (!%p9164_p8)
}
  0xcd   : > { %8889 = dma.hbm_to_vmem [thread:$0]  (!%p9700_p2), %s9704_s3, 2816, %s9706_s19, %s9548_s2, %s11315_s13, %s11315_s13, %s11314_s4  }
  0xce   : > { %s11326_s20 = sld [smem:[#allocation25_spill]] }
  0xd4   : > { %p11327_p4 = scmp.ne.s32.totalorder %s11326_s20, 0 }
  0xd6   : > { %310 = sbr.rel (%p11327_p4) target bundleno = 918 (0x396), region = 40 }
  0xdd   : > { %s9739_s9 = sand.u32 1, %s9303_s25  }
  0xde   : > { %s8853_s11 = smul.u32 176, %s9739_s9  ;;  %s313_s18 = scalar_lea.sflag [#allocation3], %s9739_s9 }
  0xe0   : > { %s9743_s12 = scalar_lea.vmem [#allocation2], %s8853_s11 }
  0xe1   : > { %9254 = dma.done.wait (%p9615_p13), %s313_s18, 2816  }
  0xe2   : > { %9256 = vsyncadd (%p9615_p13), %s313_s18, 4294964480  ;;  %s11328_s2 = sld [smem:[#allocation20_spill]]  ;;  %s11329_s4 = sld [smem:[#allocation28_spill]] }
  0xe3   : > { %s321_s13 = sand.u32 1, %s9442_s7  }
  0xe4   : > { %s322_s19 = scalar_lea.sflag [#allocation6], %s321_s13 }
  0xe8   : > { %s323_s8 = sand.u32 1, %s11328_s2   ;;  %p11330_p11 = scmp.ne.s32.totalorder %s11329_s4, 0 }
  0xe9   : > { %s8854_s3 = smul.u32 176, %s323_s8 }
  0xeb   : > { %s9751_s15 = scalar_lea.vmem [#allocation5], %s8854_s3 }
  0xec   : > { %9258 = dma.done.wait (%p11330_p11), %s322_s19, 2816  }
  0xed   : > { %9260 = vsyncadd (%p11330_p11), %s322_s19, 4294964480  ;;  %s11331_s14 = sld [smem:[#allocation18_spill]]  ;;  %p11332_p13 = scmp.ne.s32.totalorder %s11323_s30, 0 }
  0xf3   : > { %s332_s5 = sand.u32 1, %s11331_s14  }
  0xf4   : > { %s8855_s29 = smul.u32 176, %s332_s5 }
  0xf6   : > { %s9758_s28 = scalar_lea.vmem [#allocation7], %s8855_s29 }
  0xf7   : > { %9262 = dma.done.wait (%p11332_p13), %s322_s19, 2816  }
  0xf8   : > { %9264 = vsyncadd (%p11332_p13), %s322_s19, 4294964480  ;;  %p11333_p2 = scmp.eq.s32.totalorder %s9442_s7, 0 }
  0xfa   : > { %9266 = dma.done.wait (%p11333_p2), [#allocation9], 1744   ;;  %p11334_p9 = pmov %p11333_p2 }
  0xfb   : > { %vm465_vm0 = vcmask 1043456   ;;  %vm416_vm1 = vcmask 31744   ;;  %v415_v0 = vld [vmem:[#allocation8 + $0x4] sm:$0xf]  ;;  %v3357_v1 = vld [vmem:[#allocation8 + $0x34] sm:$0xf] }
  0xfc   : > { %9268 = vsyncadd (%p11334_p9), [#allocation9], 4294965552  ;;  %v398_v2 = vld [vmem:[%s9743_s12 + $0x1] sm:$0xff]  ;;  %7728 = vmatprep.subr.msk.mxu1 %vm465_vm0, %v415_v0  ;;  %8066 = vmatprep.subr.msk.mxu0 %vm465_vm0, %v3357_v1  ;;  %v3340_v3 = vld [vmem:[%s9751_s15 + $0x11] sm:$0xff]  ;;  %s6803_s30 = sshll.u32 %s9739_s9, 7  ;;  %s11345_s10 = sld [smem:[#allocation22_spill]] }
  0xfd   : > { %v399_v4 = vld [vmem:[%s9743_s12 + $0x9] sm:$0xff]  ;;  %7729 = vmatpush3.msk.msra.mxu1 %vm465_vm0, %v415_v0  ;;  %7730 = vmatprep.mubr.msk.f32.mxu1 %vm416_vm1, %v398_v2  ;;  %v3341_v6 = vld [vmem:[%s9751_s15 + $0x19] sm:$0xff]  ;;  %v9781_v8 = vld [vmem:[%s9743_s12 + $0x11] sm:$0xff]  ;;  %s11117_s7 = scalar_lea.vmem [#allocation11], %s6803_s30  ;;  %s11346_s1 = sld [smem:[#allocation21_spill]] }
  0xfe   : > { %v397_v5 = vld [vmem:[#allocation8] sm:$0xf]  ;;  %v3587_v7 = vld [vmem:[#allocation8 + $0x38] sm:$0xf]  ;;  %8067 = vmatpush3.msk.msra.mxu0 %vm465_vm0, %v3357_v1  ;;  %8068 = vmatprep.mubr.msk.f32.mxu0 %vm416_vm1, %v3340_v3  ;;  %v3817_v14 = vld [vmem:[#allocation8 + $0x3c] sm:$0xf] }
  0xff   : > { %7731 = vmatmul.mubr.msk.f32.vlgmr.msra.gmra.mrb[0].mxu1 %vm416_vm1, %v399_v4  ;;  %7754 = vmatprep.subr.msk.mxu1 %vm465_vm0, %v397_v5  ;;  %v9784_v9 = vld [vmem:[%s9751_s15 + $0x21] sm:$0xff]  ;;  %v9789_v10 = vld [vmem:[%s9743_s12 + $0x19] sm:$0xff]  ;;  %v9794_v11 = vld [vmem:[%s9751_s15 + $0x29] sm:$0xff]  ;;  %s6631_s2 = sshll.u32 %s11117_s7, 4  ;;  %s11347_s8 = sld [smem:[#allocation39_spill]]  ;;  %s11155_s2 = int_to_ptr.vmem [resolvable:$true] %s6631_s2 }
 0x100   : > { %8069 = vmatmul.mubr.msk.f32.vlgmr.msra.gmra.mrb[0].mxu0 %vm416_vm1, %v3341_v6  ;;  %8092 = vmatprep.subr.msk.mxu0 %vm465_vm0, %v3587_v7  ;;  %v9797_v12 = vld [vmem:[%s9743_s12 + $0x21] sm:$0xff]  ;;  %v9804_v13 = vld [vmem:[%s9751_s15 + $0x31] sm:$0xff]  ;;  %v9813_v15 = vld [vmem:[%s9743_s12 + $0x29] sm:$0xff]  ;;  %s6616_s19 = scalar_lea.sflag [#allocation4], %s9739_s9  ;;  %p11348_p1 = scmp.ne.s32.totalorder %s11309_s21, 0 }
 0x101   : > { %7755 = vmatpush3.msk.msra.mxu1 %vm465_vm0, %v397_v5  ;;  %8093 = vmatpush3.msk.msra.mxu0 %vm465_vm0, %v3587_v7  ;;  %v9818_v16 = vld [vmem:[%s9751_s15 + $0x39] sm:$0xff]  ;;  %v9821_v17 = vld [vmem:[%s9743_s12 + $0x31] sm:$0xff]  ;;  %v9825_v18 = vld [vmem:[%s9751_s15 + $0x41] sm:$0xff]  ;;  %s9338_s14 = smov [#allocation11]  }
 0x102   : > { %7733 = vmatprep.mubr.msk.f32.mxu1 %vm416_vm1, %v9781_v8  ;;  %8071 = vmatprep.mubr.msk.f32.mxu0 %vm416_vm1, %v9784_v9  ;;  %v9834_v19 = vld [vmem:[%s9743_s12 + $0x39] sm:$0xff]  ;;  %v9839_v21 = vld [vmem:[%s9751_s15 + $0x49] sm:$0xff]  ;;  %v9842_v22 = vld [vmem:[%s9743_s12 + $0x41] sm:$0xff]  ;;  %s8856_s20 = smul.u32 96, %s11345_s10  ;;  %s9173_s5 = sshll.u32 %s9338_s14, 4  ;;  %s9174_s5 = int_to_ptr.vmem [resolvable:$false] %s9173_s5 }
 0x103   : > { %7734 = vmatmul.mubr.msk.f32.gmra.mrb[2].mxu1 %vm416_vm1, %v9789_v10  ;;  %8118 = vmatprep.subr.msk.mxu0 %vm465_vm0, %v3817_v14  ;;  %v827_v20 = vld [vmem:[#allocation8 + $0x8] sm:$0xf]  ;;  %v9865_v28 = vld [vmem:[#allocation8 + $0x40] sm:$0xf]  ;;  %v9943_v45 = vld [vmem:[#allocation8 + $0xc] sm:$0xf]  ;;  %p9176_p12 = scmp.lt.s32.totalorder %s11155_s2, %s9174_s5 }
 0x104   : > { %8072 = vmatmul.mubr.msk.f32.gmra.mrb[2].mxu0 %vm416_vm1, %v9794_v11  ;;  %7736 = vmatprep.mubr.msk.f32.mxu1 %vm416_vm1, %v9797_v12  ;;  %v3570_v23 = vld [vmem:[%s9751_s15 + $0x12] sm:$0xff]  ;;  %v9853_v24 = vld [vmem:[%s9743_s12 + $0x49] sm:$0xff]  ;;  %v3571_v25 = vld [vmem:[%s9751_s15 + $0x1a] sm:$0xff]  ;;  %s7265_s11 = sshll.u32 %s11346_s1, 4  ;;  %s9175_s29 = scalar_lea.vmem %s9174_s5, 4096 }
 0x105   : > { %8074 = vmatprep.mubr.msk.f32.mxu0 %vm416_vm1, %v9804_v13  ;;  %7780 = vmatprep.subr.msk.mxu1 %vm465_vm0, %v827_v20  ;;  %v9858_v26 = vld [vmem:[%s9743_s12 + $0x51] sm:$0xff]  ;;  %v9861_v27 = vld [vmem:[%s9751_s15 + $0x22] sm:$0xff]  ;;  %v9871_v29 = vld [vmem:[%s9743_s12 + $0x59] sm:$0xff]  ;;  %s6628_s18 = sadd.s32 %s8856_s20, %s7265_s11 }
 0x106   : > { %v9877_v30 = vld [vmem:[%s9751_s15 + $0x2a] sm:$0xff]  ;;  %v9880_v31 = vld [vmem:[%s9743_s12 + $0x61] sm:$0xff]  ;;  %v9883_v32 = vld [vmem:[%s9751_s15 + $0x32] sm:$0xff] }
 0x107   : > { %7737 = vmatmul.mubr.msk.f32.gmra.mrb[4].mxu1 %vm416_vm1, %v9813_v15  ;;  %v9894_v33 = vld [vmem:[%s9743_s12 + $0x69] sm:$0xff]  ;;  %v9899_v34 = vld [vmem:[%s9751_s15 + $0x3a] sm:$0xff]  ;;  %v9902_v35 = vld [vmem:[%s9743_s12 + $0x71] sm:$0xff] }
 0x108   : > { %8075 = vmatmul.mubr.msk.f32.gmra.mrb[4].mxu0 %vm416_vm1, %v9818_v16  ;;  %7739 = vmatprep.mubr.msk.f32.mxu1 %vm416_vm1, %v9821_v17  ;;  %v9905_v36 = vld [vmem:[%s9751_s15 + $0x42] sm:$0xff]  ;;  %v9914_v37 = vld [vmem:[%s9743_s12 + $0x79] sm:$0xff]  ;;  %v9919_v38 = vld [vmem:[%s9751_s15 + $0x4a] sm:$0xff] }
 0x109   : > { %8077 = vmatprep.mubr.msk.f32.mxu0 %vm416_vm1, %v9825_v18  ;;  %v381_v39 = vld [vmem:[%s9743_s12] sm:$0xff]  ;;  %v9923_v40 = vld [vmem:[%s9751_s15 + $0x52] sm:$0xff]  ;;  %v382_v41 = vld [vmem:[%s9743_s12 + $0x8] sm:$0xff] }
 0x10a   : > { %v9934_v42 = vld [vmem:[%s9751_s15 + $0x5a] sm:$0xff]  ;;  %v9937_v43 = vld [vmem:[%s9743_s12 + $0x10] sm:$0xff]  ;;  %v9940_v44 = vld [vmem:[%s9751_s15 + $0x62] sm:$0xff] }
 0x10b   : > { %7740 = vmatmul.mubr.msk.f32.gmra.mrb[6].mxu1 %vm416_vm1, %v9834_v19  ;;  %v9949_v46 = vld [vmem:[%s9743_s12 + $0x18] sm:$0xff]  ;;  %v9956_v47 = vld [vmem:[%s9751_s15 + $0x6a] sm:$0xff]  ;;  %v9959_v48 = vld [vmem:[%s9743_s12 + $0x20] sm:$0xff] }
 0x10c   : > { %8078 = vmatmul.mubr.msk.f32.gmra.mrb[6].mxu0 %vm416_vm1, %v9839_v21  ;;  %7742 = vmatprep.mubr.msk.f32.mxu1 %vm416_vm1, %v9842_v22  ;;  %v9962_v49 = vld [vmem:[%s9751_s15 + $0x72] sm:$0xff]  ;;  %v9973_v50 = vld [vmem:[%s9743_s12 + $0x28] sm:$0xff]  ;;  %v9978_v51 = vld [vmem:[%s9751_s15 + $0x7a] sm:$0xff] }
 0x10d   : > { %8094 = vmatprep.mubr.msk.f32.mxu0 %vm416_vm1, %v3570_v23  ;;  %v9981_v52 = vld [vmem:[%s9743_s12 + $0x30] sm:$0xff]  ;;  %v9984_v53 = vld [vmem:[%s9751_s15 + $0x82] sm:$0xff]  ;;  %v9993_v54 = vld [vmem:[%s9743_s12 + $0x38] sm:$0xff] }
 0x10e   : > { %v9998_v55 = vld [vmem:[%s9751_s15 + $0x8a] sm:$0xff]  ;;  %v10001_v56 = vld [vmem:[%s9743_s12 + $0x40] sm:$0xff]  ;;  %v10027_v63 = vld [vmem:[%s9743_s12 + $0x58] sm:$0xff] }
 0x10f   : > { %7743 = vmatmul.mubr.msk.f32.gmra.mrb[8].mxu1 %vm416_vm1, %v9853_v24  ;;  %v3800_v57 = vld [vmem:[%s9751_s15 + $0x20] sm:$0xff]  ;;  %v10011_v58 = vld [vmem:[%s9743_s12 + $0x48] sm:$0xff]  ;;  %v10016_v60 = vld [vmem:[%s9743_s12 + $0x50] sm:$0xff] }
 0x110   : > { %8095 = vmatmul.mubr.msk.f32.vlgmr.msra.gmra.mrb[0].mxu0 %vm416_vm1, %v3571_v25  ;;  %7745 = vmatprep.mubr.msk.f32.mxu1 %vm416_vm1, %v9858_v26  ;;  %v3801_v59 = vld [vmem:[%s9751_s15 + $0x28] sm:$0xff]  ;;  %v3802_v61 = vld [vmem:[%s9751_s15 + $0x30] sm:$0xff]  ;;  %v3803_v0 = vld [vmem:[%s9751_s15 + $0x38] sm:$0xff] }
 0x111   : > { %8119 = vmatpush3.msk.msra.mxu0 %vm465_vm0, %v3817_v14  ;;  %8097 = vmatprep.mubr.msk.f32.mxu0 %vm416_vm1, %v9861_v27  ;;  %v10021_v62 = vld [vmem:[#allocation8 + $0x44] sm:$0xf]  ;;  %v10045_v3 = vld [vmem:[%s9743_s12 + $0x68] sm:$0xff]  ;;  %v10059_v7 = vld [vmem:[%s9743_s12 + $0x78] sm:$0xff] }
 0x112   : > { %8144 = vmatprep.subr.msk.mxu0 %vm465_vm0, %v9865_v28  ;;  %v10034_v1 = vld [vmem:[%s9743_s12 + $0x60] sm:$0xff]  ;;  %v3805_v4 = vld [vmem:[%s9751_s15 + $0x48] sm:$0xff]  ;;  %v10050_v5 = vld [vmem:[%s9743_s12 + $0x70] sm:$0xff] }
 0x113   : > { %7746 = vmatmul.mubr.msk.f32.gmra.mrb[10].mxu1 %vm416_vm1, %v9871_v29  ;;  %v3804_v2 = vld [vmem:[%s9751_s15 + $0x40] sm:$0xff]  ;;  %v3806_v6 = vld [vmem:[%s9751_s15 + $0x50] sm:$0xff]  ;;  %v3807_v14 = vld [vmem:[%s9751_s15 + $0x58] sm:$0xff] }
 0x114   : > { %8098 = vmatmul.mubr.msk.f32.gmra.mrb[2].mxu0 %vm416_vm1, %v9877_v30  ;;  %7748 = vmatprep.mubr.msk.f32.mxu1 %vm416_vm1, %v9880_v31  ;;  %v3808_v23 = vld [vmem:[%s9751_s15 + $0x60] sm:$0xff]  ;;  %v811_v25 = vld [vmem:[%s9743_s12 + $0xa] sm:$0xff] }
 0x115   : > { %8100 = vmatprep.mubr.msk.f32.mxu0 %vm416_vm1, %v9883_v32 }
 0x117   : > { %7749 = vmatmul.mubr.msk.f32.gmra.mrb[12].mxu1 %vm416_vm1, %v9894_v33 }
 0x118   : > { %8101 = vmatmul.mubr.msk.f32.gmra.mrb[4].mxu0 %vm416_vm1, %v9899_v34  ;;  %7751 = vmatprep.mubr.msk.f32.mxu1 %vm416_vm1, %v9902_v35 }
 0x119   : > { %8103 = vmatprep.mubr.msk.f32.mxu0 %vm416_vm1, %v9905_v36 }
 0x11b   : > { %7752 = vmatmul.mubr.msk.f32.gmra.mrb[14].mxu1 %vm416_vm1, %v9914_v37 }
 0x11c   : > { %8104 = vmatmul.mubr.msk.f32.gmra.mrb[6].mxu0 %vm416_vm1, %v9919_v38  ;;  %7756 = vmatprep.mubr.msk.f32.mxu1 %vm416_vm1, %v381_v39  ;;  %v10073_v39 = vld [vmem:[%s9743_s12 + $0x12] sm:$0xff] }
 0x11d   : > { %8106 = vmatprep.mubr.msk.f32.mxu0 %vm416_vm1, %v9923_v40 }
 0x11f   : > { %7757 = vmatmul.mubr.msk.f32.vlgmr.msra.gmra.mrb[0].mxu1 %vm416_vm1, %v382_v41  ;;  %v3810_v41 = vld [vmem:[%s9751_s15 + $0x70] sm:$0xff] }
 0x120   : > { %8107 = vmatmul.mubr.msk.f32.gmra.mrb[8].mxu0 %vm416_vm1, %v9934_v42  ;;  %7781 = vmatpush3.msk.msra.mxu1 %vm465_vm0, %v827_v20  ;;  %v810_v20 = vld [vmem:[%s9743_s12 + $0x2] sm:$0xff] }
 0x121   : > { %7759 = vmatprep.mubr.msk.f32.mxu1 %vm416_vm1, %v9937_v43  ;;  %8109 = vmatprep.mubr.msk.f32.mxu0 %vm416_vm1, %v9940_v44 }
 0x122   : > { %7806 = vmatprep.subr.msk.mxu1 %vm465_vm0, %v9943_v45 }
 0x123   : > { %7760 = vmatmul.mubr.msk.f32.gmra.mrb[2].mxu1 %vm416_vm1, %v9949_v46 }
 0x124   : > { %8110 = vmatmul.mubr.msk.f32.gmra.mrb[10].mxu0 %vm416_vm1, %v9956_v47  ;;  %7762 = vmatprep.mubr.msk.f32.mxu1 %vm416_vm1, %v9959_v48 }
 0x125   : > { %8112 = vmatprep.mubr.msk.f32.mxu0 %vm416_vm1, %v9962_v49 }
 0x127   : > { %7763 = vmatmul.mubr.msk.f32.gmra.mrb[4].mxu1 %vm416_vm1, %v9973_v50 }
 0x128   : > { %8113 = vmatmul.mubr.msk.f32.gmra.mrb[12].mxu0 %vm416_vm1, %v9978_v51  ;;  %7765 = vmatprep.mubr.msk.f32.mxu1 %vm416_vm1, %v9981_v52 }
 0x129   : > { %8115 = vmatprep.mubr.msk.f32.mxu0 %vm416_vm1, %v9984_v53 }
 0x12b   : > { %7766 = vmatmul.mubr.msk.f32.gmra.mrb[6].mxu1 %vm416_vm1, %v9993_v54 }
 0x12c   : > { %8116 = vmatmul.mubr.msk.f32.gmra.mrb[14].mxu0 %vm416_vm1, %v9998_v55  ;;  %7768 = vmatprep.mubr.msk.f32.mxu1 %vm416_vm1, %v10001_v56 }
 0x12d   : > { %8120 = vmatprep.mubr.msk.f32.mxu0 %vm416_vm1, %v3800_v57  ;;  %v10077_v57 = vld [vmem:[#allocation8 + $0x10] sm:$0xf] }
 0x12f   : > { %7769 = vmatmul.mubr.msk.f32.gmra.mrb[8].mxu1 %vm416_vm1, %v10011_v58 }
 0x130   : > { %8121 = vmatmul.mubr.msk.f32.vlgmr.msra.gmra.mrb[0].mxu0 %vm416_vm1, %v3801_v59  ;;  %7771 = vmatprep.mubr.msk.f32.mxu1 %vm416_vm1, %v10016_v60  ;;  %v10083_v59 = vld [vmem:[%s9743_s12 + $0x1a] sm:$0xff] }
 0x131   : > { %8145 = vmatpush3.msk.msra.mxu0 %vm465_vm0, %v9865_v28  ;;  %8123 = vmatprep.mubr.msk.f32.mxu0 %vm416_vm1, %v3802_v61  ;;  %v3809_v28 = vld [vmem:[%s9751_s15 + $0x68] sm:$0xff]  ;;  %v3811_v61 = vld [vmem:[%s9751_s15 + $0x78] sm:$0xff] }
 0x132   : > { %8170 = vmatprep.subr.msk.mxu0 %vm465_vm0, %v10021_v62 }
 0x133   : > { %7772 = vmatmul.mubr.msk.f32.gmra.mrb[10].mxu1 %vm416_vm1, %v10027_v63 }
 0x134   : > { %8124 = vmatmul.mubr.msk.f32.gmra.mrb[2].mxu0 %vm416_vm1, %v3803_v0  ;;  %7774 = vmatprep.mubr.msk.f32.mxu1 %vm416_vm1, %v10034_v1  ;;  %v10090_v0 = vld [vmem:[%s9743_s12 + $0x22] sm:$0xff] }
 0x135   : > { %8126 = vmatprep.mubr.msk.f32.mxu0 %vm416_vm1, %v3804_v2  ;;  %v3812_v2 = vld [vmem:[%s9751_s15 + $0x80] sm:$0xff] }
 0x137   : > { %7775 = vmatmul.mubr.msk.f32.gmra.mrb[12].mxu1 %vm416_vm1, %v10045_v3 }
 0x138   : > { %8127 = vmatmul.mubr.msk.f32.gmra.mrb[4].mxu0 %vm416_vm1, %v3805_v4  ;;  %7777 = vmatprep.mubr.msk.f32.mxu1 %vm416_vm1, %v10050_v5  ;;  %v3813_v4 = vld [vmem:[%s9751_s15 + $0x88] sm:$0xff] }
 0x139   : > { %8129 = vmatprep.mubr.msk.f32.mxu0 %vm416_vm1, %v3806_v6  ;;  %v10106_v6 = vld [vmem:[%s9743_s12 + $0x32] sm:$0xff] }
 0x13b   : > { %7778 = vmatmul.mubr.msk.f32.gmra.mrb[14].mxu1 %vm416_vm1, %v10059_v7 }
 0x13c   : > { %8130 = vmatmul.mubr.msk.f32.gmra.mrb[6].mxu0 %vm416_vm1, %v3807_v14  ;;  %7782 = vmatprep.mubr.msk.f32.mxu1 %vm416_vm1, %v810_v20  ;;  %v3814_v14 = vld [vmem:[%s9751_s15 + $0x90] sm:$0xff]  ;;  %v10115_v20 = vld [vmem:[%s9743_s12 + $0x3a] sm:$0xff] }
 0x13d   : > { %8132 = vmatprep.mubr.msk.f32.mxu0 %vm416_vm1, %v3808_v23  ;;  %v3815_v23 = vld [vmem:[%s9751_s15 + $0x98] sm:$0xff] }
 0x13f   : > { %7783 = vmatmul.mubr.msk.f32.vlgmr.msra.gmra.mrb[0].mxu1 %vm416_vm1, %v811_v25  ;;  %v10120_v25 = vld [vmem:[%s9743_s12 + $0x42] sm:$0xff] }
 0x140   : > { %8133 = vmatmul.mubr.msk.f32.gmra.mrb[8].mxu0 %vm416_vm1, %v3809_v28  ;;  %7807 = vmatpush3.msk.msra.mxu1 %vm465_vm0, %v9943_v45  ;;  %v10101_v45 = vld [vmem:[%s9743_s12 + $0x2a] sm:$0xff] }
 0x141   : > { %7785 = vmatprep.mubr.msk.f32.mxu1 %vm416_vm1, %v10073_v39  ;;  %8135 = vmatprep.mubr.msk.f32.mxu0 %vm416_vm1, %v3810_v41  ;;  %v10128_v28 = vld [vmem:[%s9743_s12 + $0x4a] sm:$0xff]  ;;  %v10133_v41 = vld [vmem:[%s9743_s12 + $0x52] sm:$0xff] }
 0x142   : > { %7832 = vmatprep.subr.msk.mxu1 %vm465_vm0, %v10077_v57 }
 0x143   : > { %7786 = vmatmul.mubr.msk.f32.gmra.mrb[2].mxu1 %vm416_vm1, %v10083_v59 }
 0x144   : > { %8136 = vmatmul.mubr.msk.f32.gmra.mrb[10].mxu0 %vm416_vm1, %v3811_v61  ;;  %7788 = vmatprep.mubr.msk.f32.mxu1 %vm416_vm1, %v10090_v0  ;;  %v4507_v61 = vld [vmem:[#allocation8 + $0x48] sm:$0xf] }
 0x145   : > { %8138 = vmatprep.mubr.msk.f32.mxu0 %vm416_vm1, %v3812_v2  ;;  %v10142_v2 = vld [vmem:[%s9743_s12 + $0x5a] sm:$0xff] }
 0x147   : > { %7789 = vmatmul.mubr.msk.f32.gmra.mrb[4].mxu1 %vm416_vm1, %v10101_v45 }
 0x148   : > { %8139 = vmatmul.mubr.msk.f32.gmra.mrb[12].mxu0 %vm416_vm1, %v3813_v4  ;;  %7791 = vmatprep.mubr.msk.f32.mxu1 %vm416_vm1, %v10106_v6  ;;  %v4037_v4 = vld [vmem:[%s9751_s15 + $0x59] sm:$0xff] }
 0x149   : > { %8141 = vmatprep.mubr.msk.f32.mxu0 %vm416_vm1, %v3814_v14  ;;  %v4040_v14 = vld [vmem:[%s9751_s15 + $0x71] sm:$0xff] }
 0x14b   : > { %7792 = vmatmul.mubr.msk.f32.gmra.mrb[6].mxu1 %vm416_vm1, %v10115_v20 }
 0x14c   : > { %8142 = vmatmul.mubr.msk.f32.gmra.mrb[14].mxu0 %vm416_vm1, %v3815_v23  ;;  %7794 = vmatprep.mubr.msk.f32.mxu1 %vm416_vm1, %v10120_v25  ;;  %v1517_v23 = vld [vmem:[#allocation8 + $0x14] sm:$0xf] }
 0x14d   : > { %8146 = vmatprep.mubr.msk.f32.mxu0 %vm416_vm1, %v9784_v9  ;;  %v10149_v9 = vld [vmem:[%s9743_s12 + $0x62] sm:$0xff] }
 0x14f   : > { %7795 = vmatmul.mubr.msk.f32.gmra.mrb[8].mxu1 %vm416_vm1, %v10128_v28 }
 0x150   : > { %8147 = vmatmul.mubr.msk.f32.vlgmr.msra.gmra.mrb[0].mxu0 %vm416_vm1, %v9794_v11  ;;  %7797 = vmatprep.mubr.msk.f32.mxu1 %vm416_vm1, %v10133_v41  ;;  %v10159_v11 = vld [vmem:[%s9743_s12 + $0x6a] sm:$0xff] }
 0x151   : > { %8171 = vmatpush3.msk.msra.mxu0 %vm465_vm0, %v10021_v62  ;;  %8149 = vmatprep.mubr.msk.f32.mxu0 %vm416_vm1, %v9804_v13  ;;  %v10164_v13 = vld [vmem:[%s9743_s12 + $0x72] sm:$0xff] }
 0x152   : > { %8196 = vmatprep.subr.msk.mxu0 %vm465_vm0, %v4507_v61  ;;  %v4036_v62 = vld [vmem:[%s9751_s15 + $0x51] sm:$0xff] }
 0x153   : > { %7798 = vmatmul.mubr.msk.f32.gmra.mrb[10].mxu1 %vm416_vm1, %v10142_v2 }
 0x154   : > { %8150 = vmatmul.mubr.msk.f32.gmra.mrb[2].mxu0 %vm416_vm1, %v9818_v16  ;;  %7800 = vmatprep.mubr.msk.f32.mxu1 %vm416_vm1, %v10149_v9  ;;  %v10174_v16 = vld [vmem:[%s9743_s12 + $0x7a] sm:$0xff] }
 0x155   : > { %8152 = vmatprep.mubr.msk.f32.mxu0 %vm416_vm1, %v9825_v18  ;;  %v4038_v18 = vld [vmem:[%s9751_s15 + $0x61] sm:$0xff] }
 0x157   : > { %7801 = vmatmul.mubr.msk.f32.gmra.mrb[12].mxu1 %vm416_vm1, %v10159_v11 }
 0x158   : > { %8153 = vmatmul.mubr.msk.f32.gmra.mrb[4].mxu0 %vm416_vm1, %v9839_v21  ;;  %7803 = vmatprep.mubr.msk.f32.mxu1 %vm416_vm1, %v10164_v13  ;;  %v4039_v21 = vld [vmem:[%s9751_s15 + $0x69] sm:$0xff] }
 0x159   : > { %8155 = vmatprep.mubr.msk.f32.mxu0 %vm416_vm1, %v4036_v62  ;;  %v4042_v62 = vld [vmem:[%s9751_s15 + $0x81] sm:$0xff] }
 0x15b   : > { %7804 = vmatmul.mubr.msk.f32.gmra.mrb[14].mxu1 %vm416_vm1, %v10174_v16 }
 0x15c   : > { %8156 = vmatmul.mubr.msk.f32.gmra.mrb[6].mxu0 %vm416_vm1, %v4037_v4  ;;  %7808 = vmatprep.mubr.msk.f32.mxu1 %vm416_vm1, %v9937_v43  ;;  %v4041_v43 = vld [vmem:[%s9751_s15 + $0x79] sm:$0xff] }
 0x15d   : > { %8158 = vmatprep.mubr.msk.f32.mxu0 %vm416_vm1, %v4038_v18  ;;  %v4045_v4 = vld [vmem:[%s9751_s15 + $0x99] sm:$0xff] }
 0x15e   : > { %v4737_v18 = vld [vmem:[#allocation8 + $0x4c] sm:$0xf] }
 0x15f   : > { %7809 = vmatmul.mubr.msk.f32.vlgmr.msra.gmra.mrb[0].mxu1 %vm416_vm1, %v9949_v46  ;;  %v4043_v46 = vld [vmem:[%s9751_s15 + $0x89] sm:$0xff] }
 0x160   : > { %8159 = vmatmul.mubr.msk.f32.gmra.mrb[8].mxu0 %vm416_vm1, %v4039_v21  ;;  %7833 = vmatpush3.msk.msra.mxu1 %vm465_vm0, %v10077_v57  ;;  %v4044_v57 = vld [vmem:[%s9751_s15 + $0x91] sm:$0xff]  ;;  %v10356_v21 = vld [vmem:[%s9758_s28 + $0x48] sm:$0xff] }
 0x161   : > { %7811 = vmatprep.mubr.msk.f32.mxu1 %vm416_vm1, %v9959_v48  ;;  %8161 = vmatprep.mubr.msk.f32.mxu0 %vm416_vm1, %v4040_v14  ;;  %v10359_v14 = vld [vmem:[%s9758_s28 + $0x50] sm:$0xff] }
 0x162   : > { %7858 = vmatprep.subr.msk.mxu1 %vm465_vm0, %v1517_v23 }
 0x163   : > { %7812 = vmatmul.mubr.msk.f32.gmra.mrb[2].mxu1 %vm416_vm1, %v9973_v50 }
 0x164   : > { %8162 = vmatmul.mubr.msk.f32.gmra.mrb[10].mxu0 %vm416_vm1, %v4041_v43  ;;  %7814 = vmatprep.mubr.msk.f32.mxu1 %vm416_vm1, %v9981_v52  ;;  %v10374_v43 = vld [vmem:[%s9758_s28 + $0x60] sm:$0xff] }
 0x165   : > { %8164 = vmatprep.mubr.msk.f32.mxu0 %vm416_vm1, %v4042_v62  ;;  %v10389_v62 = vld [vmem:[%s9758_s28 + $0x70] sm:$0xff] }
 0x167   : > { %7815 = vmatmul.mubr.msk.f32.gmra.mrb[4].mxu1 %vm416_vm1, %v9993_v54 }
 0x168   : > { %8165 = vmatmul.mubr.msk.f32.gmra.mrb[12].mxu0 %vm416_vm1, %v4043_v46  ;;  %7817 = vmatprep.mubr.msk.f32.mxu1 %vm416_vm1, %v10001_v56  ;;  %v10400_v46 = vld [vmem:[%s9758_s28 + $0x78] sm:$0xff] }
 0x169   : > { %8167 = vmatprep.mubr.msk.f32.mxu0 %vm416_vm1, %v4044_v57  ;;  %v4720_v57 = vld [vmem:[%s9758_s28 + $0x1] sm:$0xff] }
 0x16b   : > { %7818 = vmatmul.mubr.msk.f32.gmra.mrb[6].mxu1 %vm416_vm1, %v10011_v58 }
 0x16c   : > { %8168 = vmatmul.mubr.msk.f32.gmra.mrb[14].mxu0 %vm416_vm1, %v4045_v4  ;;  %7820 = vmatprep.mubr.msk.f32.mxu1 %vm416_vm1, %v10016_v60  ;;  %v4721_v4 = vld [vmem:[%s9758_s28 + $0x9] sm:$0xff] }
 0x16d   : > { %8172 = vmatprep.mubr.msk.f32.mxu0 %vm416_vm1, %v9861_v27  ;;  %v10239_v27 = vld [vmem:[%s9743_s12 + $0x80] sm:$0xff] }
 0x16f   : > { %7821 = vmatmul.mubr.msk.f32.gmra.mrb[8].mxu1 %vm416_vm1, %v10027_v63 }
 0x170   : > { %8173 = vmatmul.mubr.msk.f32.vlgmr.msra.gmra.mrb[0].mxu0 %vm416_vm1, %v9877_v30  ;;  %7823 = vmatprep.mubr.msk.f32.mxu1 %vm416_vm1, %v10034_v1  ;;  %v10248_v30 = vld [vmem:[%s9743_s12 + $0x88] sm:$0xff] }
 0x171   : > { %8197 = vmatpush3.msk.msra.mxu0 %vm465_vm0, %v4507_v61  ;;  %8175 = vmatprep.mubr.msk.f32.mxu0 %vm416_vm1, %v9883_v32  ;;  %v1747_v32 = vld [vmem:[#allocation8 + $0x18] sm:$0xf]  ;;  %v10345_v61 = vld [vmem:[%s9758_s28 + $0x40] sm:$0xff] }
 0x172   : > { %8222 = vmatprep.subr.msk.mxu0 %vm465_vm0, %v4737_v18 }
 0x173   : > { %7824 = vmatmul.mubr.msk.f32.gmra.mrb[10].mxu1 %vm416_vm1, %v10045_v3 }
 0x174   : > { %8176 = vmatmul.mubr.msk.f32.gmra.mrb[2].mxu0 %vm416_vm1, %v9899_v34  ;;  %7826 = vmatprep.mubr.msk.f32.mxu1 %vm416_vm1, %v10050_v5  ;;  %v4490_v34 = vld [vmem:[%s9758_s28] sm:$0xff] }
 0x175   : > { %8178 = vmatprep.mubr.msk.f32.mxu0 %vm416_vm1, %v9905_v36  ;;  %v4491_v36 = vld [vmem:[%s9758_s28 + $0x8] sm:$0xff] }
 0x177   : > { %7827 = vmatmul.mubr.msk.f32.gmra.mrb[12].mxu1 %vm416_vm1, %v10059_v7 }
 0x178   : > { %8179 = vmatmul.mubr.msk.f32.gmra.mrb[4].mxu0 %vm416_vm1, %v9919_v38  ;;  %7829 = vmatprep.mubr.msk.f32.mxu1 %vm416_vm1, %v10239_v27  ;;  %v10296_v38 = vld [vmem:[%s9758_s28 + $0x10] sm:$0xff] }
 0x179   : > { %8181 = vmatprep.mubr.msk.f32.mxu0 %vm416_vm1, %v9923_v40  ;;  %v4967_v40 = vld [vmem:[#allocation8 + $0x50] sm:$0xf] }
 0x17b   : > { %7830 = vmatmul.mubr.msk.f32.gmra.mrb[14].mxu1 %vm416_vm1, %v10248_v30 }
 0x17c   : > { %8182 = vmatmul.mubr.msk.f32.gmra.mrb[6].mxu0 %vm416_vm1, %v9934_v42  ;;  %7834 = vmatprep.mubr.msk.f32.mxu1 %vm416_vm1, %v9781_v8  ;;  %v4274_v8 = vld [vmem:[%s9751_s15 + $0x92] sm:$0xff] }
 0x17d   : > { %8184 = vmatprep.mubr.msk.f32.mxu0 %vm416_vm1, %v9940_v44  ;;  %v10307_v42 = vld [vmem:[%s9758_s28 + $0x18] sm:$0xff]  ;;  %v10310_v44 = vld [vmem:[%s9758_s28 + $0x20] sm:$0xff] }
 0x17f   : > { %7835 = vmatmul.mubr.msk.f32.vlgmr.msra.gmra.mrb[0].mxu1 %vm416_vm1, %v9789_v10  ;;  %v4275_v10 = vld [vmem:[%s9751_s15 + $0x9a] sm:$0xff] }
 0x180   : > { %8185 = vmatmul.mubr.msk.f32.gmra.mrb[8].mxu0 %vm416_vm1, %v9956_v47  ;;  %7859 = vmatpush3.msk.msra.mxu1 %vm465_vm0, %v1517_v23  ;;  %v10322_v47 = vld [vmem:[%s9758_s28 + $0x28] sm:$0xff] }
 0x181   : > { %7837 = vmatprep.mubr.msk.f32.mxu1 %vm416_vm1, %v9797_v12  ;;  %8187 = vmatprep.mubr.msk.f32.mxu0 %vm416_vm1, %v9962_v49  ;;  %v10325_v49 = vld [vmem:[%s9743_s12 + $0x81] sm:$0xff]  ;;  %v1977_v23 = vld [vmem:[#allocation8 + $0x1c] sm:$0xf] }
 0x182   : > { %7884 = vmatprep.subr.msk.mxu1 %vm465_vm0, %v1747_v32 }
 0x183   : > { %7838 = vmatmul.mubr.msk.f32.gmra.mrb[2].mxu1 %vm416_vm1, %v9813_v15 }
 0x184   : > { %8188 = vmatmul.mubr.msk.f32.gmra.mrb[10].mxu0 %vm416_vm1, %v9978_v51  ;;  %7840 = vmatprep.mubr.msk.f32.mxu1 %vm416_vm1, %v9821_v17  ;;  %v10328_v51 = vld [vmem:[%s9758_s28 + $0x30] sm:$0xff] }
 0x185   : > { %8190 = vmatprep.mubr.msk.f32.mxu0 %vm416_vm1, %v9984_v53  ;;  %v10337_v53 = vld [vmem:[%s9743_s12 + $0x89] sm:$0xff] }
 0x187   : > { %7841 = vmatmul.mubr.msk.f32.gmra.mrb[4].mxu1 %vm416_vm1, %v9834_v19 }
 0x188   : > { %8191 = vmatmul.mubr.msk.f32.gmra.mrb[12].mxu0 %vm416_vm1, %v9998_v55  ;;  %7843 = vmatprep.mubr.msk.f32.mxu1 %vm416_vm1, %v9842_v22  ;;  %v10342_v55 = vld [vmem:[%s9758_s28 + $0x38] sm:$0xff] }
 0x189   : > { %8193 = vmatprep.mubr.msk.f32.mxu0 %vm416_vm1, %v4274_v8  ;;  %v10423_v8 = vld [vmem:[%s9758_s28 + $0x19] sm:$0xff] }
 0x18b   : > { %7844 = vmatmul.mubr.msk.f32.gmra.mrb[6].mxu1 %vm416_vm1, %v9853_v24 }
 0x18c   : > { %8194 = vmatmul.mubr.msk.f32.gmra.mrb[14].mxu0 %vm416_vm1, %v4275_v10  ;;  %7846 = vmatprep.mubr.msk.f32.mxu1 %vm416_vm1, %v9858_v26  ;;  %v10426_v10 = vld [vmem:[%s9758_s28 + $0x21] sm:$0xff] }
 0x18d   : > { %8198 = vmatprep.mubr.msk.f32.mxu0 %vm416_vm1, %v4490_v34  ;;  %11335 = vst [vmem:[#allocation29_spill] sm:$0xff] %v10426_v10  ;;  %v10438_v34 = vld [vmem:[%s9758_s28 + $0x29] sm:$0xff] }
 0x18e   : > { %11336 = vst [vmem:[#allocation30_spill] sm:$0xff] %v10438_v34 }
 0x18f   : > { %7847 = vmatmul.mubr.msk.f32.gmra.mrb[8].mxu1 %vm416_vm1, %v9871_v29 }
 0x190   : > { %8199 = vmatmul.mubr.msk.f32.vlgmr.msra.gmra.mrb[0].mxu0 %vm416_vm1, %v4491_v36  ;;  %7849 = vmatprep.mubr.msk.f32.mxu1 %vm416_vm1, %v9880_v31  ;;  %v10441_v36 = vld [vmem:[%s9743_s12 + $0x82] sm:$0xff] }
 0x191   : > { %8223 = vmatpush3.msk.msra.mxu0 %vm465_vm0, %v4737_v18  ;;  %8201 = vmatprep.mubr.msk.f32.mxu0 %vm416_vm1, %v10296_v38  ;;  %v10412_v18 = vld [vmem:[%s9758_s28 + $0x11] sm:$0xff]  ;;  %11337 = vst [vmem:[#allocation31_spill] sm:$0xff] %v10441_v36 }
 0x192   : > { %8248 = vmatprep.subr.msk.mxu0 %vm465_vm0, %v4967_v40 }
 0x193   : > { %7850 = vmatmul.mubr.msk.f32.gmra.mrb[10].mxu1 %vm416_vm1, %v9894_v33 }
 0x194   : > { %8202 = vmatmul.mubr.msk.f32.gmra.mrb[2].mxu0 %vm416_vm1, %v10307_v42  ;;  %7852 = vmatprep.mubr.msk.f32.mxu1 %vm416_vm1, %v9902_v35 }
 0x195   : > { %8204 = vmatprep.mubr.msk.f32.mxu0 %vm416_vm1, %v10310_v44 }
 0x197   : > { %7853 = vmatmul.mubr.msk.f32.gmra.mrb[12].mxu1 %vm416_vm1, %v9914_v37 }
 0x198   : > { %8205 = vmatmul.mubr.msk.f32.gmra.mrb[4].mxu0 %vm416_vm1, %v10322_v47  ;;  %7855 = vmatprep.mubr.msk.f32.mxu1 %vm416_vm1, %v10325_v49 }
 0x199   : > { %8207 = vmatprep.mubr.msk.f32.mxu0 %vm416_vm1, %v10328_v51 }
 0x19b   : > { %7856 = vmatmul.mubr.msk.f32.gmra.mrb[14].mxu1 %vm416_vm1, %v10337_v53 }
 0x19c   : > { %8208 = vmatmul.mubr.msk.f32.gmra.mrb[6].mxu0 %vm416_vm1, %v10342_v55  ;;  %7860 = vmatprep.mubr.msk.f32.mxu1 %vm416_vm1, %v10073_v39  ;;  %v10371_v39 = vld [vmem:[%s9758_s28 + $0x58] sm:$0xff] }
 0x19d   : > { %8210 = vmatprep.mubr.msk.f32.mxu0 %vm416_vm1, %v10345_v61 }
 0x19f   : > { %7861 = vmatmul.mubr.msk.f32.vlgmr.msra.gmra.mrb[0].mxu1 %vm416_vm1, %v10083_v59  ;;  %v10386_v59 = vld [vmem:[%s9758_s28 + $0x68] sm:$0xff] }
 0x1a0   : > { %8211 = vmatmul.mubr.msk.f32.gmra.mrb[8].mxu0 %vm416_vm1, %v10356_v21  ;;  %7885 = vmatpush3.msk.msra.mxu1 %vm465_vm0, %v1747_v32  ;;  %v5197_v32 = vld [vmem:[#allocation8 + $0x54] sm:$0xf] }
 0x1a1   : > { %7863 = vmatprep.mubr.msk.f32.mxu1 %vm416_vm1, %v10090_v0  ;;  %8213 = vmatprep.mubr.msk.f32.mxu0 %vm416_vm1, %v10359_v14 }
 0x1a2   : > { %7910 = vmatprep.subr.msk.mxu1 %vm465_vm0, %v1977_v23 }
 0x1a3   : > { %7864 = vmatmul.mubr.msk.f32.gmra.mrb[2].mxu1 %vm416_vm1, %v10101_v45 }
 0x1a4   : > { %8214 = vmatmul.mubr.msk.f32.gmra.mrb[10].mxu0 %vm416_vm1, %v10371_v39  ;;  %7866 = vmatprep.mubr.msk.f32.mxu1 %vm416_vm1, %v10106_v6 }
 0x1a5   : > { %8216 = vmatprep.mubr.msk.f32.mxu0 %vm416_vm1, %v10374_v43 }
 0x1a7   : > { %7867 = vmatmul.mubr.msk.f32.gmra.mrb[4].mxu1 %vm416_vm1, %v10115_v20 }
 0x1a8   : > { %8217 = vmatmul.mubr.msk.f32.gmra.mrb[12].mxu0 %vm416_vm1, %v10386_v59  ;;  %7869 = vmatprep.mubr.msk.f32.mxu1 %vm416_vm1, %v10120_v25 }
 0x1a9   : > { %8219 = vmatprep.mubr.msk.f32.mxu0 %vm416_vm1, %v10389_v62 }
 0x1ab   : > { %7870 = vmatmul.mubr.msk.f32.gmra.mrb[6].mxu1 %vm416_vm1, %v10128_v28 }
 0x1ac   : > { %8220 = vmatmul.mubr.msk.f32.gmra.mrb[14].mxu0 %vm416_vm1, %v10400_v46  ;;  %7872 = vmatprep.mubr.msk.f32.mxu1 %vm416_vm1, %v10133_v41 }
 0x1ad   : > { %8224 = vmatprep.mubr.msk.f32.mxu0 %vm416_vm1, %v4720_v57  ;;  %v10453_v57 = vld [vmem:[%s9743_s12 + $0x8a] sm:$0xff] }
 0x1af   : > { %7873 = vmatmul.mubr.msk.f32.gmra.mrb[8].mxu1 %vm416_vm1, %v10142_v2 }
 0x1b0   : > { %8225 = vmatmul.mubr.msk.f32.vlgmr.msra.gmra.mrb[0].mxu0 %vm416_vm1, %v4721_v4  ;;  %7875 = vmatprep.mubr.msk.f32.mxu1 %vm416_vm1, %v10149_v9  ;;  %v10458_v4 = vld [vmem:[%s9758_s28 + $0x39] sm:$0xff] }
 0x1b1   : > { %8249 = vmatpush3.msk.msra.mxu0 %vm465_vm0, %v4967_v40  ;;  %8227 = vmatprep.mubr.msk.f32.mxu0 %vm416_vm1, %v10412_v18  ;;  %v10444_v40 = vld [vmem:[%s9758_s28 + $0x31] sm:$0xff] }
 0x1b2   : > { %8274 = vmatprep.subr.msk.mxu0 %vm465_vm0, %v5197_v32  ;;  %11338 = vst [vmem:[#allocation32_spill] sm:$0xff] %v10444_v40 }
 0x1b3   : > { %7876 = vmatmul.mubr.msk.f32.gmra.mrb[10].mxu1 %vm416_vm1, %v10159_v11 }
 0x1b4   : > { %8228 = vmatmul.mubr.msk.f32.gmra.mrb[2].mxu0 %vm416_vm1, %v10423_v8  ;;  %7878 = vmatprep.mubr.msk.f32.mxu1 %vm416_vm1, %v10164_v13 }
 0x1b5   : > { %8230 = vmatprep.mubr.msk.f32.mxu0 %vm416_vm1, %v10426_v10  ;;  %v10461_v10 = vld [vmem:[%s9758_s28 + $0x41] sm:$0xff] }
 0x1b6   : > { %11339 = vst [vmem:[#allocation33_spill] sm:$0xff] %v10461_v10 }
 0x1b7   : > { %7879 = vmatmul.mubr.msk.f32.gmra.mrb[12].mxu1 %vm416_vm1, %v10174_v16 }
 0x1b8   : > { %8231 = vmatmul.mubr.msk.f32.gmra.mrb[4].mxu0 %vm416_vm1, %v10438_v34  ;;  %7881 = vmatprep.mubr.msk.f32.mxu1 %vm416_vm1, %v10441_v36  ;;  %v10472_v36 = vld [vmem:[%s9758_s28 + $0x49] sm:$0xff] }
 0x1b9   : > { %8233 = vmatprep.mubr.msk.f32.mxu0 %vm416_vm1, %v10444_v40  ;;  %v10475_v40 = vld [vmem:[%s9758_s28 + $0x51] sm:$0xff] }
 0x1ba   : > { %v2207_v34 = vld [vmem:[#allocation8 + $0x20] sm:$0xf] }
 0x1bb   : > { %7882 = vmatmul.mubr.msk.f32.gmra.mrb[14].mxu1 %vm416_vm1, %v10453_v57 }
 0x1bc   : > { %8234 = vmatmul.mubr.msk.f32.gmra.mrb[6].mxu0 %vm416_vm1, %v10458_v4  ;;  %7886 = vmatprep.mubr.msk.f32.mxu1 %vm416_vm1, %v9959_v48  ;;  %v10487_v48 = vld [vmem:[%s9758_s28 + $0x59] sm:$0xff] }
 0x1bd   : > { %8236 = vmatprep.mubr.msk.f32.mxu0 %vm416_vm1, %v10461_v10  ;;  %v10490_v10 = vld [vmem:[%s9758_s28 + $0x61] sm:$0xff] }
 0x1bf   : > { %7887 = vmatmul.mubr.msk.f32.vlgmr.msra.gmra.mrb[0].mxu1 %vm416_vm1, %v9973_v50  ;;  %v10502_v50 = vld [vmem:[%s9758_s28 + $0x69] sm:$0xff] }
 0x1c0   : > { %8237 = vmatmul.mubr.msk.f32.gmra.mrb[8].mxu0 %vm416_vm1, %v10472_v36  ;;  %7911 = vmatpush3.msk.msra.mxu1 %vm465_vm0, %v1977_v23  ;;  %v5427_v23 = vld [vmem:[#allocation8 + $0x58] sm:$0xf] }
 0x1c1   : > { %7889 = vmatprep.mubr.msk.f32.mxu1 %vm416_vm1, %v9981_v52  ;;  %8239 = vmatprep.mubr.msk.f32.mxu0 %vm416_vm1, %v10475_v40  ;;  %v10505_v52 = vld [vmem:[%s9758_s28 + $0x71] sm:$0xff] }
 0x1c2   : > { %7936 = vmatprep.subr.msk.mxu1 %vm465_vm0, %v2207_v34 }
 0x1c3   : > { %7890 = vmatmul.mubr.msk.f32.gmra.mrb[2].mxu1 %vm416_vm1, %v9993_v54  ;;  %v10516_v54 = vld [vmem:[%s9758_s28 + $0x79] sm:$0xff] }
 0x1c4   : > { %8240 = vmatmul.mubr.msk.f32.gmra.mrb[10].mxu0 %vm416_vm1, %v10487_v48  ;;  %7892 = vmatprep.mubr.msk.f32.mxu1 %vm416_vm1, %v10001_v56  ;;  %v4950_v56 = vld [vmem:[%s9758_s28 + $0x2] sm:$0xff] }
 0x1c5   : > { %8242 = vmatprep.mubr.msk.f32.mxu0 %vm416_vm1, %v10490_v10 }
 0x1c7   : > { %7893 = vmatmul.mubr.msk.f32.gmra.mrb[4].mxu1 %vm416_vm1, %v10011_v58  ;;  %v4951_v58 = vld [vmem:[%s9758_s28 + $0xa] sm:$0xff] }
 0x1c8   : > { %8243 = vmatmul.mubr.msk.f32.gmra.mrb[12].mxu0 %vm416_vm1, %v10502_v50  ;;  %7895 = vmatprep.mubr.msk.f32.mxu1 %vm416_vm1, %v10016_v60  ;;  %v10528_v60 = vld [vmem:[%s9758_s28 + $0x12] sm:$0xff] }
 0x1c9   : > { %8245 = vmatprep.mubr.msk.f32.mxu0 %vm416_vm1, %v10505_v52 }
 0x1cb   : > { %7896 = vmatmul.mubr.msk.f32.gmra.mrb[6].mxu1 %vm416_vm1, %v10027_v63  ;;  %v10539_v63 = vld [vmem:[%s9758_s28 + $0x1a] sm:$0xff] }
 0x1cc   : > { %8246 = vmatmul.mubr.msk.f32.gmra.mrb[14].mxu0 %vm416_vm1, %v10516_v54  ;;  %7898 = vmatprep.mubr.msk.f32.mxu1 %vm416_vm1, %v10034_v1  ;;  %v10542_v1 = vld [vmem:[%s9758_s28 + $0x22] sm:$0xff] }
 0x1cd   : > { %8250 = vmatprep.mubr.msk.f32.mxu0 %vm416_vm1, %v4950_v56  ;;  %v10572_v56 = vld [vmem:[%s9758_s28 + $0x42] sm:$0xff] }
 0x1cf   : > { %7899 = vmatmul.mubr.msk.f32.gmra.mrb[8].mxu1 %vm416_vm1, %v10045_v3  ;;  %v10554_v3 = vld [vmem:[%s9758_s28 + $0x2a] sm:$0xff] }
 0x1d0   : > { %8251 = vmatmul.mubr.msk.f32.vlgmr.msra.gmra.mrb[0].mxu0 %vm416_vm1, %v4951_v58  ;;  %7901 = vmatprep.mubr.msk.f32.mxu1 %vm416_vm1, %v10050_v5  ;;  %v1744_v5 = vld [vmem:[%s9743_s12 + $0x90] sm:$0xff] }
 0x1d1   : > { %8275 = vmatpush3.msk.msra.mxu0 %vm465_vm0, %v5197_v32  ;;  %8253 = vmatprep.mubr.msk.f32.mxu0 %vm416_vm1, %v10528_v60  ;;  %v10558_v32 = vld [vmem:[%s9758_s28 + $0x32] sm:$0xff] }
 0x1d2   : > { %8300 = vmatprep.subr.msk.mxu0 %vm465_vm0, %v5427_v23  ;;  %v10585_v58 = vld [vmem:[%s9758_s28 + $0x52] sm:$0xff] }
 0x1d3   : > { %7902 = vmatmul.mubr.msk.f32.gmra.mrb[10].mxu1 %vm416_vm1, %v10059_v7  ;;  %v1745_v7 = vld [vmem:[%s9743_s12 + $0x98] sm:$0xff] }
 0x1d4   : > { %8254 = vmatmul.mubr.msk.f32.gmra.mrb[2].mxu0 %vm416_vm1, %v10539_v63  ;;  %7904 = vmatprep.mubr.msk.f32.mxu1 %vm416_vm1, %v10239_v27  ;;  %v10569_v27 = vld [vmem:[%s9758_s28 + $0x3a] sm:$0xff] }
 0x1d5   : > { %8256 = vmatprep.mubr.msk.f32.mxu0 %vm416_vm1, %v10542_v1 }
 0x1d7   : > { %7905 = vmatmul.mubr.msk.f32.gmra.mrb[12].mxu1 %vm416_vm1, %v10248_v30  ;;  %v10582_v30 = vld [vmem:[%s9758_s28 + $0x4a] sm:$0xff] }
 0x1d8   : > { %8257 = vmatmul.mubr.msk.f32.gmra.mrb[4].mxu0 %vm416_vm1, %v10554_v3  ;;  %7907 = vmatprep.mubr.msk.f32.mxu1 %vm416_vm1, %v1744_v5  ;;  %v2437_v5 = vld [vmem:[#allocation8 + $0x24] sm:$0xf] }
 0x1d9   : > { %8259 = vmatprep.mubr.msk.f32.mxu0 %vm416_vm1, %v10558_v32 }
 0x1db   : > { %7908 = vmatmul.mubr.msk.f32.gmra.mrb[14].mxu1 %vm416_vm1, %v1745_v7  ;;  %v10600_v7 = vld [vmem:[%s9758_s28 + $0x62] sm:$0xff] }
 0x1dc   : > { %8260 = vmatmul.mubr.msk.f32.gmra.mrb[6].mxu0 %vm416_vm1, %v10569_v27  ;;  %7912 = vmatprep.mubr.msk.f32.mxu1 %vm416_vm1, %v9797_v12  ;;  %v10597_v12 = vld [vmem:[%s9758_s28 + $0x5a] sm:$0xff] }
 0x1dd   : > { %8262 = vmatprep.mubr.msk.f32.mxu0 %vm416_vm1, %v10572_v56 }
 0x1df   : > { %7913 = vmatmul.mubr.msk.f32.vlgmr.msra.gmra.mrb[0].mxu1 %vm416_vm1, %v9813_v15  ;;  %v10612_v15 = vld [vmem:[%s9758_s28 + $0x6a] sm:$0xff] }
 0x1e0   : > { %8263 = vmatmul.mubr.msk.f32.gmra.mrb[8].mxu0 %vm416_vm1, %v10582_v30  ;;  %7937 = vmatpush3.msk.msra.mxu1 %vm465_vm0, %v2207_v34  ;;  %v10804_v34 = vld [vmem:[%s9751_s15 + $0x48] sm:$0xff] }
 0x1e1   : > { %7915 = vmatprep.mubr.msk.f32.mxu1 %vm416_vm1, %v9821_v17  ;;  %8265 = vmatprep.mubr.msk.f32.mxu0 %vm416_vm1, %v10585_v58  ;;  %v10615_v17 = vld [vmem:[%s9758_s28 + $0x72] sm:$0xff] }
 0x1e2   : > { %7962 = vmatprep.subr.msk.mxu1 %vm465_vm0, %v2437_v5 }
 0x1e3   : > { %7916 = vmatmul.mubr.msk.f32.gmra.mrb[2].mxu1 %vm416_vm1, %v9834_v19  ;;  %v10626_v19 = vld [vmem:[%s9758_s28 + $0x7a] sm:$0xff] }
 0x1e4   : > { %8266 = vmatmul.mubr.msk.f32.gmra.mrb[10].mxu0 %vm416_vm1, %v10597_v12  ;;  %7918 = vmatprep.mubr.msk.f32.mxu1 %vm416_vm1, %v9842_v22  ;;  %v5657_v22 = vld [vmem:[#allocation8 + $0x5c] sm:$0xf] }
 0x1e5   : > { %8268 = vmatprep.mubr.msk.f32.mxu0 %vm416_vm1, %v10600_v7 }
 0x1e7   : > { %7919 = vmatmul.mubr.msk.f32.gmra.mrb[4].mxu1 %vm416_vm1, %v9853_v24  ;;  %v1974_v24 = vld [vmem:[%s9743_s12 + $0x91] sm:$0xff] }
 0x1e8   : > { %8269 = vmatmul.mubr.msk.f32.gmra.mrb[12].mxu0 %vm416_vm1, %v10612_v15  ;;  %7921 = vmatprep.mubr.msk.f32.mxu1 %vm416_vm1, %v9858_v26  ;;  %v1975_v26 = vld [vmem:[%s9743_s12 + $0x99] sm:$0xff] }
 0x1e9   : > { %8271 = vmatprep.mubr.msk.f32.mxu0 %vm416_vm1, %v10615_v17 }
 0x1eb   : > { %7922 = vmatmul.mubr.msk.f32.gmra.mrb[6].mxu1 %vm416_vm1, %v9871_v29  ;;  %v2667_v29 = vld [vmem:[#allocation8 + $0x28] sm:$0xf] }
 0x1ec   : > { %8272 = vmatmul.mubr.msk.f32.gmra.mrb[14].mxu0 %vm416_vm1, %v10626_v19  ;;  %7924 = vmatprep.mubr.msk.f32.mxu1 %vm416_vm1, %v9880_v31  ;;  %v10689_v31 = vld [vmem:[%s9758_s28 + $0x80] sm:$0xff] }
 0x1ed   : > { %8276 = vmatprep.mubr.msk.f32.mxu0 %vm416_vm1, %v10296_v38  ;;  %v10770_v38 = vld [vmem:[%s9751_s15 + $0x28] sm:$0xff] }
 0x1ef   : > { %7925 = vmatmul.mubr.msk.f32.gmra.mrb[8].mxu1 %vm416_vm1, %v9894_v33  ;;  %v10700_v33 = vld [vmem:[%s9758_s28 + $0x88] sm:$0xff] }
 0x1f0   : > { %8277 = vmatmul.mubr.msk.f32.vlgmr.msra.gmra.mrb[0].mxu0 %vm416_vm1, %v10307_v42  ;;  %7927 = vmatprep.mubr.msk.f32.mxu1 %vm416_vm1, %v9902_v35  ;;  %v5887_v35 = vld [vmem:[#allocation8 + $0x60] sm:$0xf] }
 0x1f1   : > { %8301 = vmatpush3.msk.msra.mxu0 %vm465_vm0, %v5427_v23  ;;  %8279 = vmatprep.mubr.msk.f32.mxu0 %vm416_vm1, %v10310_v44  ;;  %v10775_v42 = vld [vmem:[%s9751_s15 + $0x30] sm:$0xff] }
 0x1f2   : > { %8326 = vmatprep.subr.msk.mxu0 %vm465_vm0, %v5657_v22  ;;  %v6117_v23 = vld [vmem:[#allocation8 + $0x64] sm:$0xf] }
 0x1f3   : > { %7928 = vmatmul.mubr.msk.f32.gmra.mrb[10].mxu1 %vm416_vm1, %v9914_v37  ;;  %v11340_v37 = vld [vmem:[#allocation29_spill] sm:$0xff] }
 0x1f4   : > { %8280 = vmatmul.mubr.msk.f32.gmra.mrb[2].mxu0 %vm416_vm1, %v10322_v47  ;;  %7930 = vmatprep.mubr.msk.f32.mxu1 %vm416_vm1, %v10325_v49  ;;  %v10778_v49 = vld [vmem:[%s9758_s28 + $0x81] sm:$0xff] }
 0x1f5   : > { %8282 = vmatprep.mubr.msk.f32.mxu0 %vm416_vm1, %v10328_v51 }
 0x1f7   : > { %7931 = vmatmul.mubr.msk.f32.gmra.mrb[12].mxu1 %vm416_vm1, %v10337_v53  ;;  %v10787_v53 = vld [vmem:[%s9751_s15 + $0x38] sm:$0xff] }
 0x1f8   : > { %8283 = vmatmul.mubr.msk.f32.gmra.mrb[4].mxu0 %vm416_vm1, %v10342_v55  ;;  %7933 = vmatprep.mubr.msk.f32.mxu1 %vm416_vm1, %v1974_v24  ;;  %v10848_v24 = vld [vmem:[%s9751_s15 + $0x78] sm:$0xff] }
 0x1f9   : > { %8285 = vmatprep.mubr.msk.f32.mxu0 %vm416_vm1, %v10345_v61 }
 0x1fb   : > { %7934 = vmatmul.mubr.msk.f32.gmra.mrb[14].mxu1 %vm416_vm1, %v1975_v26  ;;  %v2650_v26 = vld [vmem:[%s9751_s15 + $0x1] sm:$0xff] }
 0x1fc   : > { %8286 = vmatmul.mubr.msk.f32.gmra.mrb[6].mxu0 %vm416_vm1, %v10356_v21  ;;  %7938 = vmatprep.mubr.msk.f32.mxu1 %vm416_vm1, %v10090_v0  ;;  %v11341_v0 = vld [vmem:[#allocation30_spill] sm:$0xff] }
 0x1fd   : > { %8288 = vmatprep.mubr.msk.f32.mxu0 %vm416_vm1, %v10359_v14 }
 0x1ff   : > { %7939 = vmatmul.mubr.msk.f32.vlgmr.msra.gmra.mrb[0].mxu1 %vm416_vm1, %v10101_v45  ;;  %v11342_v45 = vld [vmem:[#allocation31_spill] sm:$0xff] }
 0x200   : > { %8289 = vmatmul.mubr.msk.f32.gmra.mrb[8].mxu0 %vm416_vm1, %v10371_v39  ;;  %7963 = vmatpush3.msk.msra.mxu1 %vm465_vm0, %v2437_v5  ;;  %v10818_v5 = vld [vmem:[%s9751_s15 + $0x58] sm:$0xff] }
 0x201   : > { %7941 = vmatprep.mubr.msk.f32.mxu1 %vm416_vm1, %v10106_v6  ;;  %8291 = vmatprep.mubr.msk.f32.mxu0 %vm416_vm1, %v10374_v43  ;;  %v11343_v6 = vld [vmem:[#allocation32_spill] sm:$0xff] }
 0x202   : > { %7988 = vmatprep.subr.msk.mxu1 %vm465_vm0, %v2667_v29 }
 0x203   : > { %7942 = vmatmul.mubr.msk.f32.gmra.mrb[2].mxu1 %vm416_vm1, %v10115_v20  ;;  %v2204_v20 = vld [vmem:[%s9743_s12 + $0x92] sm:$0xff] }
 0x204   : > { %8292 = vmatmul.mubr.msk.f32.gmra.mrb[10].mxu0 %vm416_vm1, %v10386_v59  ;;  %7944 = vmatprep.mubr.msk.f32.mxu1 %vm416_vm1, %v10120_v25  ;;  %v2205_v25 = vld [vmem:[%s9743_s12 + $0x9a] sm:$0xff]  ;;  %s7266_s12 = sshll.u32 %s6628_s18, 7 }
 0x205   : > { %8294 = vmatprep.mubr.msk.f32.mxu0 %vm416_vm1, %v10389_v62  ;;  %s11153_s3 = scalar_lea.hbm %s11347_s8, %s7266_s12 }
 0x207   : > { %7945 = vmatmul.mubr.msk.f32.gmra.mrb[4].mxu1 %vm416_vm1, %v10128_v28  ;;  %v11344_v28 = vld [vmem:[#allocation33_spill] sm:$0xff] }
 0x208   : > { %8295 = vmatmul.mubr.msk.f32.gmra.mrb[12].mxu0 %vm416_vm1, %v10400_v46  ;;  %7947 = vmatprep.mubr.msk.f32.mxu1 %vm416_vm1, %v10133_v41  ;;  %v2420_v41 = vld [vmem:[%s9751_s15] sm:$0xff] }
 0x209   : > { %8297 = vmatprep.mubr.msk.f32.mxu0 %vm416_vm1, %v10689_v31 }
 0x20b   : > { %7948 = vmatmul.mubr.msk.f32.gmra.mrb[6].mxu1 %vm416_vm1, %v10142_v2  ;;  %v2421_v2 = vld [vmem:[%s9751_s15 + $0x8] sm:$0xff] }
 0x20c   : > { %8298 = vmatmul.mubr.msk.f32.gmra.mrb[14].mxu0 %vm416_vm1, %v10700_v33  ;;  %7950 = vmatprep.mubr.msk.f32.mxu1 %vm416_vm1, %v10149_v9  ;;  %v10746_v9 = vld [vmem:[%s9751_s15 + $0x10] sm:$0xff] }
 0x20d   : > { %8302 = vmatprep.mubr.msk.f32.mxu0 %vm416_vm1, %v10412_v18  ;;  %v10792_v18 = vld [vmem:[%s9758_s28 + $0x89] sm:$0xff] }
 0x20f   : > { %7951 = vmatmul.mubr.msk.f32.gmra.mrb[8].mxu1 %vm416_vm1, %v10159_v11  ;;  %v2897_v11 = vld [vmem:[#allocation8 + $0x2c] sm:$0xf] }
 0x210   : > { %8303 = vmatmul.mubr.msk.f32.vlgmr.msra.gmra.mrb[0].mxu0 %vm416_vm1, %v10423_v8  ;;  %7953 = vmatprep.mubr.msk.f32.mxu1 %vm416_vm1, %v10164_v13  ;;  %v10753_v13 = vld [vmem:[%s9751_s15 + $0x18] sm:$0xff]  ;;  %v10795_v8 = vld [vmem:[%s9751_s15 + $0x40] sm:$0xff] }
 0x211   : > { %8327 = vmatpush3.msk.msra.mxu0 %vm465_vm0, %v5657_v22  ;;  %8305 = vmatprep.mubr.msk.f32.mxu0 %vm416_vm1, %v11340_v37  ;;  %v10839_v22 = vld [vmem:[%s9751_s15 + $0x70] sm:$0xff] }
 0x212   : > { %8352 = vmatprep.subr.msk.mxu0 %vm465_vm0, %v5887_v35 }
 0x213   : > { %7954 = vmatmul.mubr.msk.f32.gmra.mrb[10].mxu1 %vm416_vm1, %v10174_v16  ;;  %v10760_v16 = vld [vmem:[%s9751_s15 + $0x20] sm:$0xff] }
 0x214   : > { %8306 = vmatmul.mubr.msk.f32.gmra.mrb[2].mxu0 %vm416_vm1, %v11341_v0  ;;  %7956 = vmatprep.mubr.msk.f32.mxu1 %vm416_vm1, %v11342_v45  ;;  %v3127_v45 = vld [vmem:[#allocation8 + $0x30] sm:$0xf] }
 0x215   : > { %8308 = vmatprep.mubr.msk.f32.mxu0 %vm416_vm1, %v11343_v6 }
 0x217   : > { %7957 = vmatmul.mubr.msk.f32.gmra.mrb[12].mxu1 %vm416_vm1, %v10453_v57  ;;  %v10809_v57 = vld [vmem:[%s9751_s15 + $0x50] sm:$0xff] }
 0x218   : > { %8309 = vmatmul.mubr.msk.f32.gmra.mrb[4].mxu0 %vm416_vm1, %v10458_v4  ;;  %7959 = vmatprep.mubr.msk.f32.mxu1 %vm416_vm1, %v2204_v20  ;;  %v2653_v20 = vld [vmem:[%s9751_s15 + $0x19] sm:$0xff] }
 0x219   : > { %8311 = vmatprep.mubr.msk.f32.mxu0 %vm416_vm1, %v11344_v28 }
 0x21b   : > { %7960 = vmatmul.mubr.msk.f32.gmra.mrb[14].mxu1 %vm416_vm1, %v2205_v25  ;;  %v2654_v25 = vld [vmem:[%s9751_s15 + $0x21] sm:$0xff] }
 0x21c   : > { %8312 = vmatmul.mubr.msk.f32.gmra.mrb[6].mxu0 %vm416_vm1, %v10472_v36  ;;  %7964 = vmatprep.mubr.msk.f32.mxu1 %vm416_vm1, %v2420_v41  ;;  %v2655_v41 = vld [vmem:[%s9751_s15 + $0x29] sm:$0xff] }
 0x21d   : > { %8314 = vmatprep.mubr.msk.f32.mxu0 %vm416_vm1, %v10475_v40 }
 0x21f   : > { %7965 = vmatmul.mubr.msk.f32.vlgmr.msra.gmra.mrb[0].mxu1 %vm416_vm1, %v2421_v2  ;;  %v2656_v2 = vld [vmem:[%s9751_s15 + $0x31] sm:$0xff] }
 0x220   : > { %8315 = vmatmul.mubr.msk.f32.gmra.mrb[8].mxu0 %vm416_vm1, %v10487_v48  ;;  %7989 = vmatpush3.msk.msra.mxu1 %vm465_vm0, %v2667_v29  ;;  %v2651_v29 = vld [vmem:[%s9751_s15 + $0x9] sm:$0xff] }
 0x221   : > { %7967 = vmatprep.mubr.msk.f32.mxu1 %vm416_vm1, %v10746_v9  ;;  %8317 = vmatprep.mubr.msk.f32.mxu0 %vm416_vm1, %v10490_v10 }
 0x222   : > { %8014 = vmatprep.subr.msk.mxu1 %vm465_vm0, %v2897_v11 }
 0x223   : > { %7968 = vmatmul.mubr.msk.f32.gmra.mrb[2].mxu1 %vm416_vm1, %v10753_v13 }
 0x224   : > { %8318 = vmatmul.mubr.msk.f32.gmra.mrb[10].mxu0 %vm416_vm1, %v10502_v50  ;;  %7970 = vmatprep.mubr.msk.f32.mxu1 %vm416_vm1, %v10760_v16 }
 0x225   : > { %8320 = vmatprep.mubr.msk.f32.mxu0 %vm416_vm1, %v10505_v52 }
 0x227   : > { %7971 = vmatmul.mubr.msk.f32.gmra.mrb[4].mxu1 %vm416_vm1, %v10770_v38 }
 0x228   : > { %8321 = vmatmul.mubr.msk.f32.gmra.mrb[12].mxu0 %vm416_vm1, %v10516_v54  ;;  %7973 = vmatprep.mubr.msk.f32.mxu1 %vm416_vm1, %v10775_v42 }
 0x229   : > { %8323 = vmatprep.mubr.msk.f32.mxu0 %vm416_vm1, %v10778_v49 }
 0x22b   : > { %7974 = vmatmul.mubr.msk.f32.gmra.mrb[6].mxu1 %vm416_vm1, %v10787_v53 }
 0x22c   : > { %8324 = vmatmul.mubr.msk.f32.gmra.mrb[14].mxu0 %vm416_vm1, %v10792_v18  ;;  %7976 = vmatprep.mubr.msk.f32.mxu1 %vm416_vm1, %v10795_v8 }
 0x22d   : > { %8328 = vmatprep.mubr.msk.f32.mxu0 %vm416_vm1, %v10528_v60  ;;  %v10824_v60 = vld [vmem:[%s9751_s15 + $0x60] sm:$0xff] }
 0x22f   : > { %7977 = vmatmul.mubr.msk.f32.gmra.mrb[8].mxu1 %vm416_vm1, %v10804_v34 }
 0x230   : > { %8329 = vmatmul.mubr.msk.f32.vlgmr.msra.gmra.mrb[0].mxu0 %vm416_vm1, %v10539_v63  ;;  %7979 = vmatprep.mubr.msk.f32.mxu1 %vm416_vm1, %v10809_v57  ;;  %v10834_v63 = vld [vmem:[%s9751_s15 + $0x68] sm:$0xff] }
 0x231   : > { %8353 = vmatpush3.msk.msra.mxu0 %vm465_vm0, %v5887_v35  ;;  %8331 = vmatprep.mubr.msk.f32.mxu0 %vm416_vm1, %v10542_v1  ;;  %v2652_v35 = vld [vmem:[%s9751_s15 + $0x11] sm:$0xff] }
 0x232   : > { %8378 = vmatprep.subr.msk.mxu0 %vm465_vm0, %v6117_v23 }
 0x233   : > { %7980 = vmatmul.mubr.msk.f32.gmra.mrb[10].mxu1 %vm416_vm1, %v10818_v5 }
 0x234   : > { %8332 = vmatmul.mubr.msk.f32.gmra.mrb[2].mxu0 %vm416_vm1, %v10554_v3  ;;  %7982 = vmatprep.mubr.msk.f32.mxu1 %vm416_vm1, %v10824_v60 }
 0x235   : > { %8334 = vmatprep.mubr.msk.f32.mxu0 %vm416_vm1, %v10558_v32 }
 0x237   : > { %7983 = vmatmul.mubr.msk.f32.gmra.mrb[12].mxu1 %vm416_vm1, %v10834_v63 }
 0x238   : > { %8335 = vmatmul.mubr.msk.f32.gmra.mrb[4].mxu0 %vm416_vm1, %v10569_v27  ;;  %7985 = vmatprep.mubr.msk.f32.mxu1 %vm416_vm1, %v10839_v22 }
 0x239   : > { %8337 = vmatprep.mubr.msk.f32.mxu0 %vm416_vm1, %v10572_v56 }
 0x23b   : > { %7986 = vmatmul.mubr.msk.f32.gmra.mrb[14].mxu1 %vm416_vm1, %v10848_v24 }
 0x23c   : > { %8338 = vmatmul.mubr.msk.f32.gmra.mrb[6].mxu0 %vm416_vm1, %v10582_v30  ;;  %7990 = vmatprep.mubr.msk.f32.mxu1 %vm416_vm1, %v2650_v26  ;;  %v2657_v26 = vld [vmem:[%s9751_s15 + $0x39] sm:$0xff] }
 0x23d   : > { %8340 = vmatprep.mubr.msk.f32.mxu0 %vm416_vm1, %v10585_v58 }
 0x23f   : > { %7991 = vmatmul.mubr.msk.f32.vlgmr.msra.gmra.mrb[0].mxu1 %vm416_vm1, %v2651_v29  ;;  %v10891_v29 = vld [vmem:[%s9758_s28 + $0x8a] sm:$0xff] }
 0x240   : > { %8341 = vmatmul.mubr.msk.f32.gmra.mrb[8].mxu0 %vm416_vm1, %v10597_v12  ;;  %8015 = vmatpush3.msk.msra.mxu1 %vm465_vm0, %v2897_v11  ;;  %v10881_v11 = vld [vmem:[%s9758_s28 + $0x82] sm:$0xff] }
 0x241   : > { %7993 = vmatprep.mubr.msk.f32.mxu1 %vm416_vm1, %v2652_v35  ;;  %8343 = vmatprep.mubr.msk.f32.mxu0 %vm416_vm1, %v10600_v7  ;;  %v2658_v35 = vld [vmem:[%s9751_s15 + $0x41] sm:$0xff] }
 0x242   : > { %8040 = vmatprep.subr.msk.mxu1 %vm465_vm0, %v3127_v45 }
 0x243   : > { %7994 = vmatmul.mubr.msk.f32.gmra.mrb[2].mxu1 %vm416_vm1, %v2653_v20  ;;  %v2659_v20 = vld [vmem:[%s9751_s15 + $0x49] sm:$0xff] }
 0x244   : > { %8344 = vmatmul.mubr.msk.f32.gmra.mrb[10].mxu0 %vm416_vm1, %v10612_v15  ;;  %7996 = vmatprep.mubr.msk.f32.mxu1 %vm416_vm1, %v2654_v25  ;;  %v10902_v25 = vld [vmem:[%s9751_s15 + $0x51] sm:$0xff] }
 0x245   : > { %8346 = vmatprep.mubr.msk.f32.mxu0 %vm416_vm1, %v10615_v17 }
 0x247   : > { %7997 = vmatmul.mubr.msk.f32.gmra.mrb[4].mxu1 %vm416_vm1, %v2655_v41  ;;  %v6347_v41 = vld [vmem:[#allocation8 + $0x68] sm:$0xf] }
 0x248   : > { %8347 = vmatmul.mubr.msk.f32.gmra.mrb[12].mxu0 %vm416_vm1, %v10626_v19  ;;  %7999 = vmatprep.mubr.msk.f32.mxu1 %vm416_vm1, %v2656_v2  ;;  %v10910_v2 = vld [vmem:[%s9751_s15 + $0x59] sm:$0xff] }
 0x249   : > { %8349 = vmatprep.mubr.msk.f32.mxu0 %vm416_vm1, %v10881_v11 }
 0x24b   : > { %8000 = vmatmul.mubr.msk.f32.gmra.mrb[6].mxu1 %vm416_vm1, %v2657_v26  ;;  %v2887_v26 = vld [vmem:[%s9751_s15 + $0x3a] sm:$0xff] }
 0x24c   : > { %8350 = vmatmul.mubr.msk.f32.gmra.mrb[14].mxu0 %vm416_vm1, %v10891_v29  ;;  %8002 = vmatprep.mubr.msk.f32.mxu1 %vm416_vm1, %v2658_v35  ;;  %v2888_v35 = vld [vmem:[%s9751_s15 + $0x42] sm:$0xff] }
 0x24d   : > { %8354 = vmatprep.mubr.msk.f32.mxu0 %vm416_vm1, %v10310_v44  ;;  %v10916_v44 = vld [vmem:[%s9751_s15 + $0x61] sm:$0xff] }
 0x24f   : > { %8003 = vmatmul.mubr.msk.f32.gmra.mrb[8].mxu1 %vm416_vm1, %v2659_v20  ;;  %v2891_v20 = vld [vmem:[%s9751_s15 + $0x5a] sm:$0xff] }
 0x250   : > { %8355 = vmatmul.mubr.msk.f32.vlgmr.msra.gmra.mrb[0].mxu0 %vm416_vm1, %v10322_v47  ;;  %8005 = vmatprep.mubr.msk.f32.mxu1 %vm416_vm1, %v10902_v25  ;;  %v10926_v47 = vld [vmem:[%s9751_s15 + $0x69] sm:$0xff] }
 0x251   : > { %8379 = vmatpush3.msk.msra.mxu0 %vm465_vm0, %v6117_v23  ;;  %8357 = vmatprep.mubr.msk.f32.mxu0 %vm416_vm1, %v10328_v51  ;;  %v10931_v51 = vld [vmem:[%s9751_s15 + $0x71] sm:$0xff]  ;;  %v2880_v23 = vld [vmem:[%s9751_s15 + $0x2] sm:$0xff] }
 0x252   : > { %8404 = vmatprep.subr.msk.mxu0 %vm465_vm0, %v6347_v41 }
 0x253   : > { %8006 = vmatmul.mubr.msk.f32.gmra.mrb[10].mxu1 %vm416_vm1, %v10910_v2 }
 0x254   : > { %8358 = vmatmul.mubr.msk.f32.gmra.mrb[2].mxu0 %vm416_vm1, %v10342_v55  ;;  %8008 = vmatprep.mubr.msk.f32.mxu1 %vm416_vm1, %v10916_v44  ;;  %v10940_v55 = vld [vmem:[%s9751_s15 + $0x79] sm:$0xff] }
 0x255   : > { %8360 = vmatprep.mubr.msk.f32.mxu0 %vm416_vm1, %v10345_v61  ;;  %v2881_v61 = vld [vmem:[%s9751_s15 + $0xa] sm:$0xff] }
 0x257   : > { %8009 = vmatmul.mubr.msk.f32.gmra.mrb[12].mxu1 %vm416_vm1, %v10926_v47 }
 0x258   : > { %8361 = vmatmul.mubr.msk.f32.gmra.mrb[4].mxu0 %vm416_vm1, %v10356_v21  ;;  %8011 = vmatprep.mubr.msk.f32.mxu1 %vm416_vm1, %v10931_v51  ;;  %v2882_v21 = vld [vmem:[%s9751_s15 + $0x12] sm:$0xff] }
 0x259   : > { %8363 = vmatprep.mubr.msk.f32.mxu0 %vm416_vm1, %v10359_v14  ;;  %v2883_v14 = vld [vmem:[%s9751_s15 + $0x1a] sm:$0xff] }
 0x25b   : > { %8012 = vmatmul.mubr.msk.f32.gmra.mrb[14].mxu1 %vm416_vm1, %v10940_v55 }
 0x25c   : > { %8364 = vmatmul.mubr.msk.f32.gmra.mrb[6].mxu0 %vm416_vm1, %v10371_v39  ;;  %8016 = vmatprep.mubr.msk.f32.mxu1 %vm416_vm1, %v2880_v23  ;;  %v2884_v39 = vld [vmem:[%s9751_s15 + $0x22] sm:$0xff] }
 0x25d   : > { %8366 = vmatprep.mubr.msk.f32.mxu0 %vm416_vm1, %v10374_v43  ;;  %v9020_v43 = vld [vmem:[#allocation8 + $0x34] sm:$0xf] }
 0x25e   : > { %v2892_v23 = vld [vmem:[%s9751_s15 + $0x62] sm:$0xff] }
 0x25f   : > { %8017 = vmatmul.mubr.msk.f32.vlgmr.msra.gmra.mrb[0].mxu1 %vm416_vm1, %v2881_v61 }
 0x260   : > { %8367 = vmatmul.mubr.msk.f32.gmra.mrb[8].mxu0 %vm416_vm1, %v10386_v59  ;;  %8041 = vmatpush3.msk.msra.mxu1 %vm465_vm0, %v3127_v45  ;;  %v2885_v59 = vld [vmem:[%s9751_s15 + $0x2a] sm:$0xff] }
 0x261   : > { %8019 = vmatprep.mubr.msk.f32.mxu1 %vm416_vm1, %v2882_v21  ;;  %8369 = vmatprep.mubr.msk.f32.mxu0 %vm416_vm1, %v10389_v62  ;;  %v2886_v62 = vld [vmem:[%s9751_s15 + $0x32] sm:$0xff] }
 0x262   : > { %8430 = vmatprep.subr.msk.mxu1 %vm465_vm0, %v9020_v43  ;;  %v5884_v45 = vld [vmem:[%s9758_s28 + $0x90] sm:$0xff] }
 0x263   : > { %8020 = vmatmul.mubr.msk.f32.gmra.mrb[2].mxu1 %vm416_vm1, %v2883_v14 }
 0x264   : > { %8370 = vmatmul.mubr.msk.f32.gmra.mrb[10].mxu0 %vm416_vm1, %v10400_v46  ;;  %8022 = vmatprep.mubr.msk.f32.mxu1 %vm416_vm1, %v2884_v39  ;;  %v5885_v46 = vld [vmem:[%s9758_s28 + $0x98] sm:$0xff] }
 0x265   : > { %8372 = vmatprep.mubr.msk.f32.mxu0 %vm416_vm1, %v10689_v31  ;;  %v2889_v31 = vld [vmem:[%s9751_s15 + $0x4a] sm:$0xff] }
 0x267   : > { %8023 = vmatmul.mubr.msk.f32.gmra.mrb[4].mxu1 %vm416_vm1, %v2885_v59 }
 0x268   : > { %8373 = vmatmul.mubr.msk.f32.gmra.mrb[12].mxu0 %vm416_vm1, %v10700_v33  ;;  %8025 = vmatprep.mubr.msk.f32.mxu1 %vm416_vm1, %v2886_v62  ;;  %v2890_v33 = vld [vmem:[%s9751_s15 + $0x52] sm:$0xff] }
 0x269   : > { %8375 = vmatprep.mubr.msk.f32.mxu0 %vm416_vm1, %v5884_v45 }
 0x26b   : > { %8026 = vmatmul.mubr.msk.f32.gmra.mrb[6].mxu1 %vm416_vm1, %v2887_v26 }
 0x26c   : > { %8376 = vmatmul.mubr.msk.f32.gmra.mrb[14].mxu0 %vm416_vm1, %v5885_v46  ;;  %8028 = vmatprep.mubr.msk.f32.mxu1 %vm416_vm1, %v2888_v35 }
 0x26d   : > { %8380 = vmatprep.mubr.msk.f32.mxu0 %vm416_vm1, %v11340_v37  ;;  %v2893_v37 = vld [vmem:[%s9751_s15 + $0x6a] sm:$0xff] }
 0x26f   : > { %8029 = vmatmul.mubr.msk.f32.gmra.mrb[8].mxu1 %vm416_vm1, %v2889_v31 }
 0x270   : > { %8381 = vmatmul.mubr.msk.f32.vlgmr.msra.gmra.mrb[0].mxu0 %vm416_vm1, %v11341_v0  ;;  %8031 = vmatprep.mubr.msk.f32.mxu1 %vm416_vm1, %v2890_v33  ;;  %v2894_v0 = vld [vmem:[%s9751_s15 + $0x72] sm:$0xff] }
 0x271   : > { %8405 = vmatpush3.msk.msra.mxu0 %vm465_vm0, %v6347_v41  ;;  %8383 = vmatprep.mubr.msk.f32.mxu0 %vm416_vm1, %v11343_v6  ;;  %v2895_v6 = vld [vmem:[%s9751_s15 + $0x7a] sm:$0xff] }
 0x273   : > { %8032 = vmatmul.mubr.msk.f32.gmra.mrb[10].mxu1 %vm416_vm1, %v2891_v20 }
 0x274   : > { %8384 = vmatmul.mubr.msk.f32.gmra.mrb[2].mxu0 %vm416_vm1, %v10458_v4  ;;  %8034 = vmatprep.mubr.msk.f32.mxu1 %vm416_vm1, %v2892_v23  ;;  %v3125_v4 = vld [vmem:[%s9751_s15 + $0x88] sm:$0xff] }
 0x275   : > { %8386 = vmatprep.mubr.msk.f32.mxu0 %vm416_vm1, %v11344_v28 }
 0x277   : > { %8035 = vmatmul.mubr.msk.f32.gmra.mrb[12].mxu1 %vm416_vm1, %v2893_v37 }
 0x278   : > { %8387 = vmatmul.mubr.msk.f32.gmra.mrb[4].mxu0 %vm416_vm1, %v10472_v36  ;;  %8037 = vmatprep.mubr.msk.f32.mxu1 %vm416_vm1, %v2894_v0  ;;  %v6115_v36 = vld [vmem:[%s9758_s28 + $0x99] sm:$0xff] }
 0x279   : > { %8389 = vmatprep.mubr.msk.f32.mxu0 %vm416_vm1, %v10475_v40  ;;  %v3124_v40 = vld [vmem:[%s9751_s15 + $0x80] sm:$0xff] }
 0x27b   : > { %8038 = vmatmul.mubr.msk.f32.gmra.mrb[14].mxu1 %vm416_vm1, %v2895_v6 }
 0x27c   : > { %8390 = vmatmul.mubr.msk.f32.gmra.mrb[6].mxu0 %vm416_vm1, %v10487_v48  ;;  %8042 = vmatprep.mubr.msk.f32.mxu1 %vm416_vm1, %v10746_v9  ;;  %v3354_v48 = vld [vmem:[%s9751_s15 + $0x81] sm:$0xff] }
 0x27d   : > { %8392 = vmatprep.mubr.msk.f32.mxu0 %vm416_vm1, %v10490_v10  ;;  %v6114_v10 = vld [vmem:[%s9758_s28 + $0x91] sm:$0xff] }
 0x27f   : > { %8043 = vmatmul.mubr.msk.f32.vlgmr.msra.gmra.mrb[0].mxu1 %vm416_vm1, %v10753_v13 }
 0x280   : > { %8393 = vmatmul.mubr.msk.f32.gmra.mrb[8].mxu0 %vm416_vm1, %v10502_v50  ;;  %8431 = vmatpush3.msk.msra.mxu1 %vm465_vm0, %v9020_v43  ;;  %v6344_v50 = vld [vmem:[%s9758_s28 + $0x92] sm:$0xff] }
 0x281   : > { %8045 = vmatprep.mubr.msk.f32.mxu1 %vm416_vm1, %v10760_v16  ;;  %8395 = vmatprep.mubr.msk.f32.mxu0 %vm416_vm1, %v10505_v52  ;;  %v3355_v52 = vld [vmem:[%s9751_s15 + $0x89] sm:$0xff]  ;;  %s9169_s15 = scalar_lea.vmem %s11155_s2, 2048 }
 0x282   : > { %p9170_p0 = scmp.ne.s32.totalorder %s11155_s2, %s9169_s15  ;;  %p9177_p5 = scmp.lt.s32.totalorder %s9175_s29, %s9169_s15 }
 0x283   : > { %8046 = vmatmul.mubr.msk.f32.gmra.mrb[2].mxu1 %vm416_vm1, %v10770_v38 }
 0x284   : > { %8396 = vmatmul.mubr.msk.f32.gmra.mrb[10].mxu0 %vm416_vm1, %v10516_v54  ;;  %8048 = vmatprep.mubr.msk.f32.mxu1 %vm416_vm1, %v10775_v42  ;;  %v6345_v54 = vld [vmem:[%s9758_s28 + $0x9a] sm:$0xff]  ;;  %p9171_p6 = pnand %p9170_p0, %p11348_p1  ;;  %p9178_p7 = por %p9177_p5, %p9176_p12 }
 0x285   : > { %8398 = vmatprep.mubr.msk.f32.mxu0 %vm416_vm1, %v10778_v49 }
 0x286   : > { %p9172_p3 = pneg %p9171_p6 }
 0x287   : > { %8049 = vmatmul.mubr.msk.f32.gmra.mrb[4].mxu1 %vm416_vm1, %v10787_v53 }
 0x288   : > { %8399 = vmatmul.mubr.msk.f32.gmra.mrb[12].mxu0 %vm416_vm1, %v10792_v18  ;;  %8051 = vmatprep.mubr.msk.f32.mxu1 %vm416_vm1, %v10795_v8  ;;  %p9179_p10 = pnand %p9178_p7, %p9172_p3 }
 0x289   : > { %8401 = vmatprep.mubr.msk.f32.mxu0 %vm416_vm1, %v6114_v10 }
 0x28b   : > { %8052 = vmatmul.mubr.msk.f32.gmra.mrb[6].mxu1 %vm416_vm1, %v10804_v34 }
 0x28c   : > { %8402 = vmatmul.mubr.msk.f32.gmra.mrb[14].mxu0 %vm416_vm1, %v6115_v36  ;;  %8054 = vmatprep.mubr.msk.f32.mxu1 %vm416_vm1, %v10809_v57 }
 0x28d   : > { %8406 = vmatprep.mubr.msk.f32.mxu0 %vm416_vm1, %v10542_v1 }
 0x28f   : > { %8055 = vmatmul.mubr.msk.f32.gmra.mrb[8].mxu1 %vm416_vm1, %v10818_v5 }
 0x290   : > { %8407 = vmatmul.mubr.msk.f32.vlgmr.msra.gmra.mrb[0].mxu0 %vm416_vm1, %v10554_v3  ;;  %8057 = vmatprep.mubr.msk.f32.mxu1 %vm416_vm1, %v10824_v60 }
 0x291   : > { %8409 = vmatprep.mubr.msk.f32.mxu0 %vm416_vm1, %v10558_v32 }
 0x293   : > { %8058 = vmatmul.mubr.msk.f32.gmra.mrb[10].mxu1 %vm416_vm1, %v10834_v63 }
 0x294   : > { %8410 = vmatmul.mubr.msk.f32.gmra.mrb[2].mxu0 %vm416_vm1, %v10569_v27  ;;  %8060 = vmatprep.mubr.msk.f32.mxu1 %vm416_vm1, %v10839_v22 }
 0x295   : > { %8412 = vmatprep.mubr.msk.f32.mxu0 %vm416_vm1, %v10572_v56 }
 0x297   : > { %8061 = vmatmul.mubr.msk.f32.gmra.mrb[12].mxu1 %vm416_vm1, %v10848_v24 }
 0x298   : > { %8413 = vmatmul.mubr.msk.f32.gmra.mrb[4].mxu0 %vm416_vm1, %v10582_v30  ;;  %8063 = vmatprep.mubr.msk.f32.mxu1 %vm416_vm1, %v3124_v40 }
 0x299   : > { %8415 = vmatprep.mubr.msk.f32.mxu0 %vm416_vm1, %v10585_v58 }
 0x29b   : > { %8064 = vmatmul.mubr.msk.f32.gmra.mrb[14].mxu1 %vm416_vm1, %v3125_v4 }
 0x29c   : > { %8416 = vmatmul.mubr.msk.f32.gmra.mrb[6].mxu0 %vm416_vm1, %v10597_v12  ;;  %8080 = vmatprep.mubr.msk.f32.mxu1 %vm416_vm1, %v10902_v25 }
 0x29d   : > { %8418 = vmatprep.mubr.msk.f32.mxu0 %vm416_vm1, %v10600_v7 }
 0x29f   : > { %8081 = vmatmul.mubr.msk.f32.vlgmr.msra.gmra.mrb[8].mxu1 %vm416_vm1, %v10910_v2 }
 0x2a0   : > { %8419 = vmatmul.mubr.msk.f32.gmra.mrb[8].mxu0 %vm416_vm1, %v10612_v15  ;;  %8083 = vmatprep.mubr.msk.f32.mxu1 %vm416_vm1, %v10916_v44  ;;  %v11112_v15 = vld [vmem:[#allocation10] ss:$0 sm:$0xff] }
 0x2a1   : > { %8421 = vmatprep.mubr.msk.f32.mxu0 %vm416_vm1, %v10615_v17 }
 0x2a3   : > { %8084 = vmatmul.mubr.msk.f32.gmra.mrb[10].mxu1 %vm416_vm1, %v10926_v47 }
 0x2a4   : > { %8422 = vmatmul.mubr.msk.f32.gmra.mrb[10].mxu0 %vm416_vm1, %v10626_v19  ;;  %8086 = vmatprep.mubr.msk.f32.mxu1 %vm416_vm1, %v10931_v51 }
 0x2a5   : > { %8424 = vmatprep.mubr.msk.f32.mxu0 %vm416_vm1, %v10881_v11 }
 0x2a7   : > { %8087 = vmatmul.mubr.msk.f32.gmra.mrb[12].mxu1 %vm416_vm1, %v10940_v55 }
 0x2a8   : > { %8425 = vmatmul.mubr.msk.f32.gmra.mrb[12].mxu0 %vm416_vm1, %v10891_v29  ;;  %8089 = vmatprep.mubr.msk.f32.mxu1 %vm416_vm1, %v3354_v48 }
 0x2a9   : > { %8427 = vmatprep.mubr.msk.f32.mxu0 %vm416_vm1, %v6344_v50 }
 0x2ab   : > { %8090 = vmatmul.mubr.msk.f32.gmra.mrb[14].mxu1 %vm416_vm1, %v3355_v52 }
 0x2ac   : > { %8428 = vmatmul.mubr.msk.f32.gmra.mrb[14].mxu0 %vm416_vm1, %v6345_v54 }
 0x352   : > { %v8044_v1 = vpop.f32.mrb[0].mxu1 }
 0x353   : > { %v3245_v3 = vpop.f32.mrb[1].mxu1 }
 0x356   : > { %v8047_v32 = vpop.f32.mrb[2].mxu1 }
 0x357   : > { %v3255_v27 = vpop.f32.mrb[3].mxu1 }
 0x35a   : > { %v8050_v56 = vpop.f32.mrb[4].mxu1 }
 0x35b   : > { %v3265_v30 = vpop.f32.mrb[5].mxu1 }
 0x35e   : > { %v8053_v58 = vpop.f32.mrb[6].mxu1 }
 0x35f   : > { %v3275_v12 = vpop.f32.mrb[7].mxu1 }
 0x363   : > { %v8408_v7 = vpop.f32.mrb[0].mxu0 }
 0x364   : > { %v8432_v17 = vadd.f32 %v8408_v7, %v8044_v1  ;;  %v6465_v19 = vpop.f32.mrb[1].mxu0 }
 0x365   : > { %v8433_v28 = vadd.f32 %v6465_v19, %v3245_v3 }
 0x366   : > { %v6568_v9 = vadd.f32 %v8432_v17, %v11112_v15 }
 0x367   : > { %v6567_v13 = vadd.f32 %v8433_v28, %v11112_v15  ;;  %v8411_v16 = vpop.f32.mrb[2].mxu0 }
 0x368   : > { %v6584_v38 = vmax.f32 %v6568_v9, 0.0  ;;  %v8434_v42 = vadd.f32 %v8411_v16, %v8047_v32  ;;  %v6475_v49 = vpop.f32.mrb[3].mxu0 }
 0x369   : > { %v6583_v53 = vmax.f32 %v6567_v13, 0.0  ;;  %v8435_v18 = vadd.f32 %v6475_v49, %v3255_v27 }
 0x36a   : > { %6600 = vst [vmem:[%s11117_s7 + $0x8] sm:$0xff] %v6584_v38  ;;  %v6570_v8 = vadd.f32 %v8434_v42, %v11112_v15 }
 0x36b   : > { %6599 = vst [vmem:[%s11117_s7] sm:$0xff] %v6583_v53  ;;  %v6569_v34 = vadd.f32 %v8435_v18, %v11112_v15  ;;  %v8414_v57 = vpop.f32.mrb[4].mxu0 }
 0x36c   : > { %v6586_v5 = vmax.f32 %v6570_v8, 0.0  ;;  %v8436_v60 = vadd.f32 %v8414_v57, %v8050_v56  ;;  %v6485_v63 = vpop.f32.mrb[5].mxu0 }
 0x36d   : > { %v6585_v22 = vmax.f32 %v6569_v34, 0.0  ;;  %v8437_v24 = vadd.f32 %v6485_v63, %v3265_v30 }
 0x36e   : > { %6602 = vst [vmem:[%s11117_s7 + $0x18] sm:$0xff] %v6586_v5  ;;  %v6572_v11 = vadd.f32 %v8436_v60, %v11112_v15 }
 0x36f   : > { %6601 = vst [vmem:[%s11117_s7 + $0x10] sm:$0xff] %v6585_v22  ;;  %v6571_v29 = vadd.f32 %v8437_v24, %v11112_v15  ;;  %v8417_v25 = vpop.f32.mrb[6].mxu0 }
 0x370   : > { %v6588_v41 = vmax.f32 %v6572_v11, 0.0  ;;  %v8438_v2 = vadd.f32 %v8417_v25, %v8053_v58  ;;  %v6495_v44 = vpop.f32.mrb[7].mxu0 }
 0x371   : > { %v6587_v47 = vmax.f32 %v6571_v29, 0.0  ;;  %v8439_v51 = vadd.f32 %v6495_v44, %v3275_v12 }
 0x372   : > { %6604 = vst [vmem:[%s11117_s7 + $0x28] sm:$0xff] %v6588_v41  ;;  %v6574_v55 = vadd.f32 %v8438_v2, %v11112_v15  ;;  %v8082_v61 = vpop.f32.mrb[8].mxu1 }
 0x373   : > { %6603 = vst [vmem:[%s11117_s7 + $0x20] sm:$0xff] %v6587_v47  ;;  %v6573_v21 = vadd.f32 %v8439_v51, %v11112_v15  ;;  %v8420_v14 = vpop.f32.mrb[8].mxu0  ;;  %v3515_v39 = vpop.f32.mrb[9].mxu1 }
 0x374   : > { %v6590_v43 = vmax.f32 %v6574_v55, 0.0  ;;  %v8440_v59 = vadd.f32 %v8420_v14, %v8082_v61  ;;  %v6505_v62 = vpop.f32.mrb[9].mxu0 }
 0x375   : > { %v6589_v45 = vmax.f32 %v6573_v21, 0.0  ;;  %v8441_v26 = vadd.f32 %v6505_v62, %v3515_v39 }
 0x376   : > { %6606 = vst [vmem:[%s11117_s7 + $0x38] sm:$0xff] %v6590_v43  ;;  %v6576_v46 = vadd.f32 %v8440_v59, %v11112_v15  ;;  %v8085_v35 = vpop.f32.mrb[10].mxu1 }
 0x377   : > { %6605 = vst [vmem:[%s11117_s7 + $0x30] sm:$0xff] %v6589_v45  ;;  %v6575_v31 = vadd.f32 %v8441_v26, %v11112_v15  ;;  %v8423_v33 = vpop.f32.mrb[10].mxu0  ;;  %v3525_v20 = vpop.f32.mrb[11].mxu1 }
 0x378   : > { %v6592_v23 = vmax.f32 %v6576_v46, 0.0  ;;  %v8442_v37 = vadd.f32 %v8423_v33, %v8085_v35  ;;  %v6515_v0 = vpop.f32.mrb[11].mxu0 }
 0x379   : > { %v6591_v6 = vmax.f32 %v6575_v31, 0.0  ;;  %v8443_v10 = vadd.f32 %v6515_v0, %v3525_v20 }
 0x37a   : > { %6608 = vst [vmem:[%s11117_s7 + $0x48] sm:$0xff] %v6592_v23  ;;  %v6578_v36 = vadd.f32 %v8442_v37, %v11112_v15  ;;  %v8088_v40 = vpop.f32.mrb[12].mxu1 }
 0x37b   : > { %6607 = vst [vmem:[%s11117_s7 + $0x40] sm:$0xff] %v6591_v6  ;;  %v6577_v4 = vadd.f32 %v8443_v10, %v11112_v15  ;;  %v8426_v48 = vpop.f32.mrb[12].mxu0  ;;  %v3535_v50 = vpop.f32.mrb[13].mxu1 }
 0x37c   : > { %v6594_v52 = vmax.f32 %v6578_v36, 0.0  ;;  %v8444_v54 = vadd.f32 %v8426_v48, %v8088_v40  ;;  %v6525_v1 = vpop.f32.mrb[13].mxu0 }
 0x37d   : > { %v6593_v3 = vmax.f32 %v6577_v4, 0.0  ;;  %v8445_v32 = vadd.f32 %v6525_v1, %v3535_v50 }
 0x37e   : > { %6610 = vst [vmem:[%s11117_s7 + $0x58] sm:$0xff] %v6594_v52  ;;  %v6580_v27 = vadd.f32 %v8444_v54, %v11112_v15  ;;  %v8091_v56 = vpop.f32.mrb[14].mxu1 }
 0x37f   : > { %6609 = vst [vmem:[%s11117_s7 + $0x50] sm:$0xff] %v6593_v3  ;;  %v6579_v30 = vadd.f32 %v8445_v32, %v11112_v15  ;;  %v8429_v58 = vpop.f32.mrb[14].mxu0  ;;  %v3545_v12 = vpop.f32.mrb[15].mxu1 }
 0x380   : > { %v6596_v7 = vmax.f32 %v6580_v27, 0.0  ;;  %v8446_v17 = vadd.f32 %v8429_v58, %v8091_v56  ;;  %v6535_v19 = vpop.f32.mrb[15].mxu0 }
 0x381   : > { %v6595_v28 = vmax.f32 %v6579_v30, 0.0  ;;  %v8447_v9 = vadd.f32 %v6535_v19, %v3545_v12 }
 0x382   : > { %6612 = vst [vmem:[%s11117_s7 + $0x68] sm:$0xff] %v6596_v7  ;;  %v6582_v13 = vadd.f32 %v8446_v17, %v11112_v15 }
 0x383   : > { %6611 = vst [vmem:[%s11117_s7 + $0x60] sm:$0xff] %v6595_v28  ;;  %v6581_v16 = vadd.f32 %v8447_v9, %v11112_v15 }
 0x384   : > { %v6598_v38 = vmax.f32 %v6582_v13, 0.0 }
 0x385   : > { %v6597_v42 = vmax.f32 %v6581_v16, 0.0 }
 0x386   : > { %6614 = vst [vmem:[%s11117_s7 + $0x78] sm:$0xff] %v6598_v38 }
 0x387   : > { %6613 = vst [vmem:[%s11117_s7 + $0x70] sm:$0xff] %v6597_v42 }
 0x388   : > { %9182 = shalt.err (!%p9179_p10)
}
 0x389   : > { %s9183_s28 = scalar_lea.hbm %s11153_s3, 2048  ;;  %s9187_s10 = scalar_lea.hbm %s11347_s8, 24576 }
 0x38a   : > { %p9184_p8 = scmp.ne.s32.totalorder %s11153_s3, %s9183_s28  ;;  %p9188_p13 = scmp.lt.u32.totalorder %s11153_s3, %s11347_s8 }
 0x38b   : > { %p9189_p2 = scmp.lt.u32.totalorder %s9187_s10, %s9183_s28  ;;  %p9191_p0 = scmp.lt.u32.totalorder %s9183_s28, %s11153_s3 }
 0x38c   : > { %p9185_p4 = pnand %p9184_p8, %p11348_p1 }
 0x38d   : > { %p9190_p9 = por %p9189_p2, %p9188_p13 }
 0x38e   : > { %p9186_p11 = pneg %p9185_p4 }
 0x38f   : > { %p9192_p6 = por %p9191_p0, %p9190_p9 }
 0x391   : > { %p9193_p3 = pnand %p9192_p6, %p9186_p11 }
 0x393   : > { %9196 = shalt.err (!%p9193_p3)
}
 0x394   : > { %s9339_s11 = smov 128   ;;  %s9340_s18 = smov 8  }
 0x395   : > { %8871 = dma.vmem_to_hbm [thread:$0]  (%p11348_p1), %s11155_s2, 2048, %s11153_s3, %s6616_s19, %s9339_s11, %s9339_s11, %s9340_s18  }
 0x396 PF: > { %p8899_p12 = scmp.ge.s32.totalorder %s9327_s6, 2  ;;  %s6646_s12 = sand.u32 1, %s9299_s24  }
 0x397   : > { %p11349_p5 = scmp.ne.s32.totalorder %s11311_s17, 0  ;;  %s6647_s4 = scalar_lea.sflag [#allocation4], %s6646_s12 }
 0x399   : > { %p8891_p7 = pnand %p8899_p12, %p11349_p5 }
 0x39b   : > { %9270 = dma.done.wait (!%p8891_p7), %s6647_s4, 2048  }
 0x39c   : > { %9272 = vsyncadd (!%p8891_p7), %s6647_s4, 4294965248  ;;  %s25_s6 = sadd.s32 1, %s9327_s6   ;;  %s11351_s18 = sld [smem:[#allocation18_spill]] }
 0x39d   : > { %p11188_p10 = scmp.ge.s32.totalorder %s25_s6, 14   ;;  %s11352_s19 = sld [smem:[#allocation19_spill]] }
 0x39e   : > { %s11353_s21 = sld [smem:[#allocation20_spill]]  ;;  %s11354_s9 = smov %s9524_s22 }
 0x39f   : > { %s11355_s17 = sld [smem:[#allocation23_spill]]  ;;  %s11356_s28 = sld [smem:[#allocation24_spill]] }
 0x3a0   : > { %s11357_s29 = sld [smem:[#allocation26_spill]]  ;;  %s11358_s30 = sld [smem:[#allocation27_spill]] }
 0x3a1   : > { %s11359_s20 = smov %s9681_s16  ;;  %s11360_s22 = smov %s9295_s23 }
 0x3a2   : > { %s11361_s23 = smov %s11354_s9  ;;  %s11362_s24 = smov %s9303_s25 }
 0x3a3   : > { %s11363_s25 = smov %s9307_s26  ;;  %s11364_s26 = smov %s9609_s27 }
 0x3a4   :  { %24 = sbr.rel (!%p11188_p10) target bundleno = 20 (0x14), region = 143 }
 0x3a5   : > { %s11365_s27 = smov %s11355_s17 }
 0x3ab   :  { %6652 = vsyncpa [#allocation3], 1 }
 0x3ac   :  { %6654 = vsyncpa [#allocation3 + $0x1], 1 }
 0x3ad   :  { %6655 = vsyncpa [#allocation6], 1 }
 0x3ae   :  { %6657 = vsyncpa [#allocation6 + $0x1], 1 }
 0x3af   :  { %6658 = vsyncpa [#allocation9], 1 }
 0x3b0   :  { %6659 = vsyncpa [#allocation4], 1 }
 0x3b1   :  { %6661 = vsyncpa [#allocation4 + $0x1], 1 }

</bundles_post_ra>
